<compile_context>
chip_gen: v6e
topology: v6e:2x2x1
jax: 0.10.0
libtpu: 0.0.40
codegen_flags: <defaults>
</compile_context>

<pallas_src>
import jax
import jax.numpy as jnp
from jax import lax
from jax.experimental import pallas as pl
from jax.experimental.pallas import tpu as pltpu

# ----------------------------- problem constants ----------------------------
SIGMA, RHO, BETA = 10.0, 28.0, 8.0 / 3.0   # Lorenz-63 ("f" / "Jf" pair)
LEN_VAR = 3                                # len_var
DELTA_T = 0.01                             # delta_t  (attractor / Lya_Spec step)
N_TAU = 4                                  # len(sequ_tau)
DELTA_TAU = DELTA_T / N_TAU                # delta_tau (sub-attractor / Jacobian step)
N_T = 138                                  # len(sequ_t)  (attractor steps)
LOC_REM = 10                               # transient removal
N_POINTS = N_T - LOC_REM                   # 128 retained points (lane-aligned)
TN = 128                                   # lane tile


# ------------------------------ fused kernel --------------------------------
def _fls_kernel(x0_ref, o_ref):
    f32 = jnp.float32
    zrow = jnp.zeros((1, TN), f32)
    orow = jnp.ones((1, TN), f32)
    zero11 = jnp.zeros((1, 1), f32)
    one11 = jnp.ones((1, 1), f32)
    lane = lax.broadcasted_iota(jnp.int32, (1, TN), 1)

    def lorenz(x, y, z):
        return (SIGMA * (y - x), x * (RHO - z) - y, x * y - BETA * z)

    def rk4(x, y, z, dt):
        k1x, k1y, k1z = lorenz(x, y, z)
        k2x, k2y, k2z = lorenz(x + 0.5 * dt * k1x, y + 0.5 * dt * k1y, z + 0.5 * dt * k1z)
        k3x, k3y, k3z = lorenz(x + 0.5 * dt * k2x, y + 0.5 * dt * k2y, z + 0.5 * dt * k2z)
        k4x, k4y, k4z = lorenz(x + dt * k3x, y + dt * k3y, z + dt * k3z)
        c = dt / 6.0
        return (x + c * (k1x + 2.0 * k2x + 2.0 * k3x + k4x),
                y + c * (k1y + 2.0 * k2y + 2.0 * k3y + k4y),
                z + c * (k1z + 2.0 * k2z + 2.0 * k3z + k4z))

    # ---- attractor: serial RK4; retained points deposited along the lanes ---
    # (inherently sequential scalar work -> the serial Amdahl floor; fusing it
    #  here removes the XLA while-loop and the host-visible boundary.)
    x = zero11 + x0_ref[0]
    y = zero11 + x0_ref[1]
    z = zero11 + x0_ref[2]

    def att_step(t, carry):
        x, y, z, bx, by, bz = carry
        dep = lane == (t - LOC_REM)          # never true while t < LOC_REM
        bx = jnp.where(dep, x, bx)
        by = jnp.where(dep, y, by)
        bz = jnp.where(dep, z, bz)
        x, y, z = rk4(x, y, z, DELTA_T)
        return (x, y, z, bx, by, bz)

    _, _, _, bx, by, bz = lax.fori_loop(
        0, N_T, att_step, (x, y, z, zrow, zrow, zrow))
    # bx/by/bz now hold the (len_var, N_POINTS) block, rows kept as vregs
    # (TODO(synk): reference tsequ_to_vec reshape interleaves under row-major;
    #  the intended variables-by-time layout is implemented.)

    # ---- sub-attractor + flow-map Jacobian, vectorized over the 128 lanes ---
    # TODO(synk): tangent map uses first-order (I + dtau*J(s)) propagation at
    # the pre-substep state (exact Jacobian-module source unavailable).
    def tau_step(_, carry):
        (sx, sy, sz,
         p00, p01, p02, p10, p11, p12, p20, p21, p22) = carry
        dt = DELTA_TAU
        j10 = RHO - sz
        j12 = -sx
        j20 = sy
        j21 = sx
        n00 = p00 + dt * (SIGMA * (p10 - p00))
        n01 = p01 + dt * (SIGMA * (p11 - p01))
        n02 = p02 + dt * (SIGMA * (p12 - p02))
        n10 = p10 + dt * (j10 * p00 - p10 + j12 * p20)
        n11 = p11 + dt * (j10 * p01 - p11 + j12 * p21)
        n12 = p12 + dt * (j10 * p02 - p12 + j12 * p22)
        n20 = p20 + dt * (j20 * p00 + j21 * p10 - BETA * p20)
        n21 = p21 + dt * (j20 * p01 + j21 * p11 - BETA * p21)
        n22 = p22 + dt * (j20 * p02 + j21 * p12 - BETA * p22)
        sx, sy, sz = rk4(sx, sy, sz, dt)
        return (sx, sy, sz, n00, n01, n02, n10, n11, n12, n20, n21, n22)

    carry0 = (bx, by, bz,
              orow, zrow, zrow,
              zrow, orow, zrow,
              zrow, zrow, orow)
    carry = lax.fori_loop(0, N_TAU, tau_step, carry0, unroll=True)
    (_, _, _, p00, p01, p02, p10, p11, p12, p20, p21, p22) = carry

    # ---- Benettin QR via modified Gram-Schmidt, serial over the 128 points --
    tiny = 1e-30

    def pick(row, k):                        # lane-k extraction (masked reduce)
        return jnp.sum(jnp.where(lane == k, row, 0.0), axis=1, keepdims=True)

    def ben_step(k, carry):
        (q00, q01, q02, q10, q11, q12, q20, q21, q22,
         c0, c1, c2, s0, s1, s2) = carry
        # 3x3 flow-map Jacobian of point k
        e00 = pick(p00, k); e01 = pick(p01, k); e02 = pick(p02, k)
        e10 = pick(p10, k); e11 = pick(p11, k); e12 = pick(p12, k)
        e20 = pick(p20, k); e21 = pick(p21, k); e22 = pick(p22, k)
        # A = Phi_k @ Q
        a00 = e00 * q00 + e01 * q10 + e02 * q20
        a01 = e00 * q01 + e01 * q11 + e02 * q21
        a02 = e00 * q02 + e01 * q12 + e02 * q22
        a10 = e10 * q00 + e11 * q10 + e12 * q20
        a11 = e10 * q01 + e11 * q11 + e12 * q21
        a12 = e10 * q02 + e11 * q12 + e12 * q22
        a20 = e20 * q00 + e21 * q10 + e22 * q20
        a21 = e20 * q01 + e21 * q11 + e22 * q21
        a22 = e20 * q02 + e21 * q12 + e22 * q22
        # modified Gram-Schmidt on the columns of A (R diagonal >= 0)
        n0 = a00 * a00 + a10 * a10 + a20 * a20
        r00 = jnp.sqrt(n0)
        i0 = lax.rsqrt(n0 + tiny)
        q00n = a00 * i0; q10n = a10 * i0; q20n = a20 * i0
        r01 = q00n * a01 + q10n * a11 + q20n * a21
        v0 = a01 - r01 * q00n; v1 = a11 - r01 * q10n; v2 = a21 - r01 * q20n
        n1 = v0 * v0 + v1 * v1 + v2 * v2
        r11 = jnp.sqrt(n1)
        i1 = lax.rsqrt(n1 + tiny)
        q01n = v0 * i1; q11n = v1 * i1; q21n = v2 * i1
        r02 = q00n * a02 + q10n * a12 + q20n * a22
        w0 = a02 - r02 * q00n; w1 = a12 - r02 * q10n; w2 = a22 - r02 * q20n
        r12 = q01n * w0 + q11n * w1 + q21n * w2
        w0 = w0 - r12 * q01n; w1 = w1 - r12 * q11n; w2 = w2 - r12 * q21n
        n2 = w0 * w0 + w1 * w1 + w2 * w2
        r22 = jnp.sqrt(n2)
        i2 = lax.rsqrt(n2 + tiny)
        q02n = w0 * i2; q12n = w1 * i2; q22n = w2 * i2
        # running Lyapunov estimates; accumulate their sum (-> mean at the end)
        c0 = c0 + jnp.log(r00 + tiny)
        c1 = c1 + jnp.log(r11 + tiny)
        c2 = c2 + jnp.log(r22 + tiny)
        kcount = (jnp.zeros((1, 1), jnp.int32) + (k + 1)).astype(f32)
        inv_t = 1.0 / (kcount * DELTA_T)
        s0 = s0 + c0 * inv_t
        s1 = s1 + c1 * inv_t
        s2 = s2 + c2 * inv_t
        return (q00n, q01n, q02n, q10n, q11n, q12n, q20n, q21n, q22n,
                c0, c1, c2, s0, s1, s2)

    ben0 = (one11, zero11, zero11,
            zero11, one11, zero11,
            zero11, zero11, one11,
            zero11, zero11, zero11,
            zero11, zero11, zero11)
    res = lax.fori_loop(0, N_POINTS, ben_step, ben0)
    s0, s1, s2 = res[12], res[13], res[14]

    inv_n = 1.0 / float(N_POINTS)            # final per-exponent mean, fused
    o_ref[...] = jnp.concatenate([s0 * inv_n, s1 * inv_n, s2 * inv_n], axis=0)


# --------------------------------- forward ----------------------------------
@jax.jit
def fls_forward(input_x):
    means = pl.pallas_call(
        _fls_kernel,
        out_shape=jax.ShapeDtypeStruct((LEN_VAR, 1), jnp.float32),
        in_specs=[pl.BlockSpec(memory_space=pltpu.MemorySpace.SMEM)],
        out_specs=pl.BlockSpec(memory_space=pltpu.MemorySpace.VMEM),
    )(input_x.astype(jnp.float32))
    return means[:, 0]                       # (len_var,) mean Lyapunov exponents


if __name__ == "__main__":
    key = jax.random.PRNGKey(0)
    # initial state near the Lorenz attractor
    input_x = (jax.random.normal(key, (LEN_VAR,), dtype=jnp.float32) * 0.5
               + jnp.array([1.0, 1.0, 20.0], dtype=jnp.float32))
    out = jax.block_until_ready(fls_forward(input_x))
    assert out.shape == (LEN_VAR,)
    assert bool(jnp.all(jnp.isfinite(out)))
    print("KERNEL_OK")
</pallas_src>

<mosaic_0001>
module attributes {stable_mosaic.version = 11 : i64} {
  func.func @_fls_kernel(%arg0: memref<3xf32, #tpu.memory_space<smem>>, %arg1: memref<3x1xf32, #tpu.memory_space<vmem>>) attributes {dimension_semantics = [], scalar_prefetch = 0 : i64, scratch_operands = 0 : i64, tpu.core_type = #tpu.core_type<tc>} {
    %cst = arith.constant 0.000000e+00 : f32
    %0 = vector.broadcast %cst : f32 to vector<1x128xf32>
    %cst_0 = arith.constant 1.000000e+00 : f32
    %1 = vector.broadcast %cst_0 : f32 to vector<1x128xf32>
    %cst_1 = arith.constant 0.000000e+00 : f32
    %2 = vector.broadcast %cst_1 : f32 to vector<1x1xf32>
    %cst_2 = arith.constant 1.000000e+00 : f32
    %3 = vector.broadcast %cst_2 : f32 to vector<1x1xf32>
    %4 = tpu.iota {dimensions = array<i32: 1>} : vector<1x128xi32>
    %c0 = arith.constant 0 : index
    %5 = memref.load %arg0[%c0] : memref<3xf32, #tpu.memory_space<smem>>
    %6 = vector.broadcast %5 : f32 to vector<1x1xf32>
    %7 = arith.addf %2, %6 : vector<1x1xf32>
    %c1 = arith.constant 1 : index
    %8 = memref.load %arg0[%c1] : memref<3xf32, #tpu.memory_space<smem>>
    %9 = vector.broadcast %8 : f32 to vector<1x1xf32>
    %10 = arith.addf %2, %9 : vector<1x1xf32>
    %c2 = arith.constant 2 : index
    %11 = memref.load %arg0[%c2] : memref<3xf32, #tpu.memory_space<smem>>
    %12 = vector.broadcast %11 : f32 to vector<1x1xf32>
    %13 = arith.addf %2, %12 : vector<1x1xf32>
    %c0_i32 = arith.constant 0 : i32
    %c138_i32 = arith.constant 138 : i32
    %14 = arith.addi %c0_i32, %c138_i32 : i32
    %c1_i32 = arith.constant 1 : i32
    %15:6 = scf.for %arg2 = %c0_i32 to %14 step %c1_i32 iter_args(%arg3 = %7, %arg4 = %10, %arg5 = %13, %arg6 = %0, %arg7 = %0, %arg8 = %0) -> (vector<1x1xf32>, vector<1x1xf32>, vector<1x1xf32>, vector<1x128xf32>, vector<1x128xf32>, vector<1x128xf32>)  : i32 {
      %c10_i32 = arith.constant 10 : i32
      %710 = arith.subi %arg2, %c10_i32 : i32
      %711 = vector.broadcast %710 : i32 to vector<1x128xi32>
      %712 = arith.cmpi eq, %4, %711 : vector<1x128xi32>
      %713 = vector.shape_cast %arg3 : vector<1x1xf32> to vector<1x1xf32>
      %714 = vector.broadcast %713 : vector<1x1xf32> to vector<1x128xf32>
      %715 = arith.select %712, %714, %arg6 : vector<1x128xi1>, vector<1x128xf32>
      %716 = vector.shape_cast %arg4 : vector<1x1xf32> to vector<1x1xf32>
      %717 = vector.broadcast %716 : vector<1x1xf32> to vector<1x128xf32>
      %718 = arith.select %712, %717, %arg7 : vector<1x128xi1>, vector<1x128xf32>
      %719 = vector.shape_cast %arg5 : vector<1x1xf32> to vector<1x1xf32>
      %720 = vector.broadcast %719 : vector<1x1xf32> to vector<1x128xf32>
      %721 = arith.select %712, %720, %arg8 : vector<1x128xi1>, vector<1x128xf32>
      %722 = arith.subf %arg4, %arg3 : vector<1x1xf32>
      %cst_202 = arith.constant 1.000000e+01 : f32
      %723 = vector.broadcast %cst_202 : f32 to vector<1x1xf32>
      %724 = arith.mulf %723, %722 : vector<1x1xf32>
      %cst_203 = arith.constant 2.800000e+01 : f32
      %725 = vector.broadcast %cst_203 : f32 to vector<1x1xf32>
      %726 = arith.subf %725, %arg5 : vector<1x1xf32>
      %727 = arith.mulf %arg3, %726 : vector<1x1xf32>
      %728 = arith.subf %727, %arg4 : vector<1x1xf32>
      %729 = arith.mulf %arg3, %arg4 : vector<1x1xf32>
      %cst_204 = arith.constant 2.66666675 : f32
      %730 = vector.broadcast %cst_204 : f32 to vector<1x1xf32>
      %731 = arith.mulf %730, %arg5 : vector<1x1xf32>
      %732 = arith.subf %729, %731 : vector<1x1xf32>
      %cst_205 = arith.constant 5.000000e-03 : f32
      %733 = vector.broadcast %cst_205 : f32 to vector<1x1xf32>
      %734 = arith.mulf %733, %724 : vector<1x1xf32>
      %735 = arith.addf %arg3, %734 : vector<1x1xf32>
      %cst_206 = arith.constant 5.000000e-03 : f32
      %736 = vector.broadcast %cst_206 : f32 to vector<1x1xf32>
      %737 = arith.mulf %736, %728 : vector<1x1xf32>
      %738 = arith.addf %arg4, %737 : vector<1x1xf32>
      %cst_207 = arith.constant 5.000000e-03 : f32
      %739 = vector.broadcast %cst_207 : f32 to vector<1x1xf32>
      %740 = arith.mulf %739, %732 : vector<1x1xf32>
      %741 = arith.addf %arg5, %740 : vector<1x1xf32>
      %742 = arith.subf %738, %735 : vector<1x1xf32>
      %cst_208 = arith.constant 1.000000e+01 : f32
      %743 = vector.broadcast %cst_208 : f32 to vector<1x1xf32>
      %744 = arith.mulf %743, %742 : vector<1x1xf32>
      %cst_209 = arith.constant 2.800000e+01 : f32
      %745 = vector.broadcast %cst_209 : f32 to vector<1x1xf32>
      %746 = arith.subf %745, %741 : vector<1x1xf32>
      %747 = arith.mulf %735, %746 : vector<1x1xf32>
      %748 = arith.subf %747, %738 : vector<1x1xf32>
      %749 = arith.mulf %735, %738 : vector<1x1xf32>
      %cst_210 = arith.constant 2.66666675 : f32
      %750 = vector.broadcast %cst_210 : f32 to vector<1x1xf32>
      %751 = arith.mulf %750, %741 : vector<1x1xf32>
      %752 = arith.subf %749, %751 : vector<1x1xf32>
      %cst_211 = arith.constant 5.000000e-03 : f32
      %753 = vector.broadcast %cst_211 : f32 to vector<1x1xf32>
      %754 = arith.mulf %753, %744 : vector<1x1xf32>
      %755 = arith.addf %arg3, %754 : vector<1x1xf32>
      %cst_212 = arith.constant 5.000000e-03 : f32
      %756 = vector.broadcast %cst_212 : f32 to vector<1x1xf32>
      %757 = arith.mulf %756, %748 : vector<1x1xf32>
      %758 = arith.addf %arg4, %757 : vector<1x1xf32>
      %cst_213 = arith.constant 5.000000e-03 : f32
      %759 = vector.broadcast %cst_213 : f32 to vector<1x1xf32>
      %760 = arith.mulf %759, %752 : vector<1x1xf32>
      %761 = arith.addf %arg5, %760 : vector<1x1xf32>
      %762 = arith.subf %758, %755 : vector<1x1xf32>
      %cst_214 = arith.constant 1.000000e+01 : f32
      %763 = vector.broadcast %cst_214 : f32 to vector<1x1xf32>
      %764 = arith.mulf %763, %762 : vector<1x1xf32>
      %cst_215 = arith.constant 2.800000e+01 : f32
      %765 = vector.broadcast %cst_215 : f32 to vector<1x1xf32>
      %766 = arith.subf %765, %761 : vector<1x1xf32>
      %767 = arith.mulf %755, %766 : vector<1x1xf32>
      %768 = arith.subf %767, %758 : vector<1x1xf32>
      %769 = arith.mulf %755, %758 : vector<1x1xf32>
      %cst_216 = arith.constant 2.66666675 : f32
      %770 = vector.broadcast %cst_216 : f32 to vector<1x1xf32>
      %771 = arith.mulf %770, %761 : vector<1x1xf32>
      %772 = arith.subf %769, %771 : vector<1x1xf32>
      %cst_217 = arith.constant 0.00999999977 : f32
      %773 = vector.broadcast %cst_217 : f32 to vector<1x1xf32>
      %774 = arith.mulf %773, %764 : vector<1x1xf32>
      %775 = arith.addf %arg3, %774 : vector<1x1xf32>
      %cst_218 = arith.constant 0.00999999977 : f32
      %776 = vector.broadcast %cst_218 : f32 to vector<1x1xf32>
      %777 = arith.mulf %776, %768 : vector<1x1xf32>
      %778 = arith.addf %arg4, %777 : vector<1x1xf32>
      %cst_219 = arith.constant 0.00999999977 : f32
      %779 = vector.broadcast %cst_219 : f32 to vector<1x1xf32>
      %780 = arith.mulf %779, %772 : vector<1x1xf32>
      %781 = arith.addf %arg5, %780 : vector<1x1xf32>
      %782 = arith.subf %778, %775 : vector<1x1xf32>
      %cst_220 = arith.constant 1.000000e+01 : f32
      %783 = vector.broadcast %cst_220 : f32 to vector<1x1xf32>
      %784 = arith.mulf %783, %782 : vector<1x1xf32>
      %cst_221 = arith.constant 2.800000e+01 : f32
      %785 = vector.broadcast %cst_221 : f32 to vector<1x1xf32>
      %786 = arith.subf %785, %781 : vector<1x1xf32>
      %787 = arith.mulf %775, %786 : vector<1x1xf32>
      %788 = arith.subf %787, %778 : vector<1x1xf32>
      %789 = arith.mulf %775, %778 : vector<1x1xf32>
      %cst_222 = arith.constant 2.66666675 : f32
      %790 = vector.broadcast %cst_222 : f32 to vector<1x1xf32>
      %791 = arith.mulf %790, %781 : vector<1x1xf32>
      %792 = arith.subf %789, %791 : vector<1x1xf32>
      %cst_223 = arith.constant 2.000000e+00 : f32
      %793 = vector.broadcast %cst_223 : f32 to vector<1x1xf32>
      %794 = arith.mulf %793, %744 : vector<1x1xf32>
      %795 = arith.addf %724, %794 : vector<1x1xf32>
      %cst_224 = arith.constant 2.000000e+00 : f32
      %796 = vector.broadcast %cst_224 : f32 to vector<1x1xf32>
      %797 = arith.mulf %796, %764 : vector<1x1xf32>
      %798 = arith.addf %795, %797 : vector<1x1xf32>
      %799 = arith.addf %798, %784 : vector<1x1xf32>
      %cst_225 = arith.constant 0.00166666671 : f32
      %800 = vector.broadcast %cst_225 : f32 to vector<1x1xf32>
      %801 = arith.mulf %800, %799 : vector<1x1xf32>
      %802 = arith.addf %arg3, %801 : vector<1x1xf32>
      %cst_226 = arith.constant 2.000000e+00 : f32
      %803 = vector.broadcast %cst_226 : f32 to vector<1x1xf32>
      %804 = arith.mulf %803, %748 : vector<1x1xf32>
      %805 = arith.addf %728, %804 : vector<1x1xf32>
      %cst_227 = arith.constant 2.000000e+00 : f32
      %806 = vector.broadcast %cst_227 : f32 to vector<1x1xf32>
      %807 = arith.mulf %806, %768 : vector<1x1xf32>
      %808 = arith.addf %805, %807 : vector<1x1xf32>
      %809 = arith.addf %808, %788 : vector<1x1xf32>
      %cst_228 = arith.constant 0.00166666671 : f32
      %810 = vector.broadcast %cst_228 : f32 to vector<1x1xf32>
      %811 = arith.mulf %810, %809 : vector<1x1xf32>
      %812 = arith.addf %arg4, %811 : vector<1x1xf32>
      %cst_229 = arith.constant 2.000000e+00 : f32
      %813 = vector.broadcast %cst_229 : f32 to vector<1x1xf32>
      %814 = arith.mulf %813, %752 : vector<1x1xf32>
      %815 = arith.addf %732, %814 : vector<1x1xf32>
      %cst_230 = arith.constant 2.000000e+00 : f32
      %816 = vector.broadcast %cst_230 : f32 to vector<1x1xf32>
      %817 = arith.mulf %816, %772 : vector<1x1xf32>
      %818 = arith.addf %815, %817 : vector<1x1xf32>
      %819 = arith.addf %818, %792 : vector<1x1xf32>
      %cst_231 = arith.constant 0.00166666671 : f32
      %820 = vector.broadcast %cst_231 : f32 to vector<1x1xf32>
      %821 = arith.mulf %820, %819 : vector<1x1xf32>
      %822 = arith.addf %arg5, %821 : vector<1x1xf32>
      scf.yield %802, %812, %822, %715, %718, %721 : vector<1x1xf32>, vector<1x1xf32>, vector<1x1xf32>, vector<1x128xf32>, vector<1x128xf32>, vector<1x128xf32>
    }
    %c138_i32_3 = arith.constant 138 : i32
    %c0_i32_4 = arith.constant 0 : i32
    %cst_5 = arith.constant 2.800000e+01 : f32
    %16 = vector.broadcast %cst_5 : f32 to vector<1x128xf32>
    %17 = arith.subf %16, %15#5 : vector<1x128xf32>
    %cst_6 = arith.constant 0.000000e+00 : f32
    %18 = vector.broadcast %cst_6 : f32 to vector<1x128xf32>
    %19 = arith.subf %18, %15#3 : vector<1x128xf32>
    %20 = arith.subf %0, %1 : vector<1x128xf32>
    %cst_7 = arith.constant 1.000000e+01 : f32
    %21 = vector.broadcast %cst_7 : f32 to vector<1x128xf32>
    %22 = arith.mulf %21, %20 : vector<1x128xf32>
    %cst_8 = arith.constant 2.500000e-03 : f32
    %23 = vector.broadcast %cst_8 : f32 to vector<1x128xf32>
    %24 = arith.mulf %23, %22 : vector<1x128xf32>
    %25 = arith.addf %1, %24 : vector<1x128xf32>
    %26 = arith.subf %1, %0 : vector<1x128xf32>
    %cst_9 = arith.constant 1.000000e+01 : f32
    %27 = vector.broadcast %cst_9 : f32 to vector<1x128xf32>
    %28 = arith.mulf %27, %26 : vector<1x128xf32>
    %cst_10 = arith.constant 2.500000e-03 : f32
    %29 = vector.broadcast %cst_10 : f32 to vector<1x128xf32>
    %30 = arith.mulf %29, %28 : vector<1x128xf32>
    %31 = arith.addf %0, %30 : vector<1x128xf32>
    %32 = arith.subf %0, %0 : vector<1x128xf32>
    %cst_11 = arith.constant 1.000000e+01 : f32
    %33 = vector.broadcast %cst_11 : f32 to vector<1x128xf32>
    %34 = arith.mulf %33, %32 : vector<1x128xf32>
    %cst_12 = arith.constant 2.500000e-03 : f32
    %35 = vector.broadcast %cst_12 : f32 to vector<1x128xf32>
    %36 = arith.mulf %35, %34 : vector<1x128xf32>
    %37 = arith.addf %0, %36 : vector<1x128xf32>
    %38 = arith.mulf %17, %1 : vector<1x128xf32>
    %39 = arith.subf %38, %0 : vector<1x128xf32>
    %40 = arith.mulf %19, %0 : vector<1x128xf32>
    %41 = arith.addf %39, %40 : vector<1x128xf32>
    %cst_13 = arith.constant 2.500000e-03 : f32
    %42 = vector.broadcast %cst_13 : f32 to vector<1x128xf32>
    %43 = arith.mulf %42, %41 : vector<1x128xf32>
    %44 = arith.addf %0, %43 : vector<1x128xf32>
    %45 = arith.mulf %17, %0 : vector<1x128xf32>
    %46 = arith.subf %45, %1 : vector<1x128xf32>
    %47 = arith.mulf %19, %0 : vector<1x128xf32>
    %48 = arith.addf %46, %47 : vector<1x128xf32>
    %cst_14 = arith.constant 2.500000e-03 : f32
    %49 = vector.broadcast %cst_14 : f32 to vector<1x128xf32>
    %50 = arith.mulf %49, %48 : vector<1x128xf32>
    %51 = arith.addf %1, %50 : vector<1x128xf32>
    %52 = arith.mulf %17, %0 : vector<1x128xf32>
    %53 = arith.subf %52, %0 : vector<1x128xf32>
    %54 = arith.mulf %19, %1 : vector<1x128xf32>
    %55 = arith.addf %53, %54 : vector<1x128xf32>
    %cst_15 = arith.constant 2.500000e-03 : f32
    %56 = vector.broadcast %cst_15 : f32 to vector<1x128xf32>
    %57 = arith.mulf %56, %55 : vector<1x128xf32>
    %58 = arith.addf %0, %57 : vector<1x128xf32>
    %59 = arith.mulf %15#4, %1 : vector<1x128xf32>
    %60 = arith.mulf %15#3, %0 : vector<1x128xf32>
    %61 = arith.addf %59, %60 : vector<1x128xf32>
    %cst_16 = arith.constant 2.66666675 : f32
    %62 = vector.broadcast %cst_16 : f32 to vector<1x128xf32>
    %63 = arith.mulf %62, %0 : vector<1x128xf32>
    %64 = arith.subf %61, %63 : vector<1x128xf32>
    %cst_17 = arith.constant 2.500000e-03 : f32
    %65 = vector.broadcast %cst_17 : f32 to vector<1x128xf32>
    %66 = arith.mulf %65, %64 : vector<1x128xf32>
    %67 = arith.addf %0, %66 : vector<1x128xf32>
    %68 = arith.mulf %15#4, %0 : vector<1x128xf32>
    %69 = arith.mulf %15#3, %1 : vector<1x128xf32>
    %70 = arith.addf %68, %69 : vector<1x128xf32>
    %cst_18 = arith.constant 2.66666675 : f32
    %71 = vector.broadcast %cst_18 : f32 to vector<1x128xf32>
    %72 = arith.mulf %71, %0 : vector<1x128xf32>
    %73 = arith.subf %70, %72 : vector<1x128xf32>
    %cst_19 = arith.constant 2.500000e-03 : f32
    %74 = vector.broadcast %cst_19 : f32 to vector<1x128xf32>
    %75 = arith.mulf %74, %73 : vector<1x128xf32>
    %76 = arith.addf %0, %75 : vector<1x128xf32>
    %77 = arith.mulf %15#4, %0 : vector<1x128xf32>
    %78 = arith.mulf %15#3, %0 : vector<1x128xf32>
    %79 = arith.addf %77, %78 : vector<1x128xf32>
    %cst_20 = arith.constant 2.66666675 : f32
    %80 = vector.broadcast %cst_20 : f32 to vector<1x128xf32>
    %81 = arith.mulf %80, %1 : vector<1x128xf32>
    %82 = arith.subf %79, %81 : vector<1x128xf32>
    %cst_21 = arith.constant 2.500000e-03 : f32
    %83 = vector.broadcast %cst_21 : f32 to vector<1x128xf32>
    %84 = arith.mulf %83, %82 : vector<1x128xf32>
    %85 = arith.addf %1, %84 : vector<1x128xf32>
    %86 = arith.subf %15#4, %15#3 : vector<1x128xf32>
    %cst_22 = arith.constant 1.000000e+01 : f32
    %87 = vector.broadcast %cst_22 : f32 to vector<1x128xf32>
    %88 = arith.mulf %87, %86 : vector<1x128xf32>
    %cst_23 = arith.constant 2.800000e+01 : f32
    %89 = vector.broadcast %cst_23 : f32 to vector<1x128xf32>
    %90 = arith.subf %89, %15#5 : vector<1x128xf32>
    %91 = arith.mulf %15#3, %90 : vector<1x128xf32>
    %92 = arith.subf %91, %15#4 : vector<1x128xf32>
    %93 = arith.mulf %15#3, %15#4 : vector<1x128xf32>
    %cst_24 = arith.constant 2.66666675 : f32
    %94 = vector.broadcast %cst_24 : f32 to vector<1x128xf32>
    %95 = arith.mulf %94, %15#5 : vector<1x128xf32>
    %96 = arith.subf %93, %95 : vector<1x128xf32>
    %cst_25 = arith.constant 1.250000e-03 : f32
    %97 = vector.broadcast %cst_25 : f32 to vector<1x128xf32>
    %98 = arith.mulf %97, %88 : vector<1x128xf32>
    %99 = arith.addf %15#3, %98 : vector<1x128xf32>
    %cst_26 = arith.constant 1.250000e-03 : f32
    %100 = vector.broadcast %cst_26 : f32 to vector<1x128xf32>
    %101 = arith.mulf %100, %92 : vector<1x128xf32>
    %102 = arith.addf %15#4, %101 : vector<1x128xf32>
    %cst_27 = arith.constant 1.250000e-03 : f32
    %103 = vector.broadcast %cst_27 : f32 to vector<1x128xf32>
    %104 = arith.mulf %103, %96 : vector<1x128xf32>
    %105 = arith.addf %15#5, %104 : vector<1x128xf32>
    %106 = arith.subf %102, %99 : vector<1x128xf32>
    %cst_28 = arith.constant 1.000000e+01 : f32
    %107 = vector.broadcast %cst_28 : f32 to vector<1x128xf32>
    %108 = arith.mulf %107, %106 : vector<1x128xf32>
    %cst_29 = arith.constant 2.800000e+01 : f32
    %109 = vector.broadcast %cst_29 : f32 to vector<1x128xf32>
    %110 = arith.subf %109, %105 : vector<1x128xf32>
    %111 = arith.mulf %99, %110 : vector<1x128xf32>
    %112 = arith.subf %111, %102 : vector<1x128xf32>
    %113 = arith.mulf %99, %102 : vector<1x128xf32>
    %cst_30 = arith.constant 2.66666675 : f32
    %114 = vector.broadcast %cst_30 : f32 to vector<1x128xf32>
    %115 = arith.mulf %114, %105 : vector<1x128xf32>
    %116 = arith.subf %113, %115 : vector<1x128xf32>
    %cst_31 = arith.constant 1.250000e-03 : f32
    %117 = vector.broadcast %cst_31 : f32 to vector<1x128xf32>
    %118 = arith.mulf %117, %108 : vector<1x128xf32>
    %119 = arith.addf %15#3, %118 : vector<1x128xf32>
    %cst_32 = arith.constant 1.250000e-03 : f32
    %120 = vector.broadcast %cst_32 : f32 to vector<1x128xf32>
    %121 = arith.mulf %120, %112 : vector<1x128xf32>
    %122 = arith.addf %15#4, %121 : vector<1x128xf32>
    %cst_33 = arith.constant 1.250000e-03 : f32
    %123 = vector.broadcast %cst_33 : f32 to vector<1x128xf32>
    %124 = arith.mulf %123, %116 : vector<1x128xf32>
    %125 = arith.addf %15#5, %124 : vector<1x128xf32>
    %126 = arith.subf %122, %119 : vector<1x128xf32>
    %cst_34 = arith.constant 1.000000e+01 : f32
    %127 = vector.broadcast %cst_34 : f32 to vector<1x128xf32>
    %128 = arith.mulf %127, %126 : vector<1x128xf32>
    %cst_35 = arith.constant 2.800000e+01 : f32
    %129 = vector.broadcast %cst_35 : f32 to vector<1x128xf32>
    %130 = arith.subf %129, %125 : vector<1x128xf32>
    %131 = arith.mulf %119, %130 : vector<1x128xf32>
    %132 = arith.subf %131, %122 : vector<1x128xf32>
    %133 = arith.mulf %119, %122 : vector<1x128xf32>
    %cst_36 = arith.constant 2.66666675 : f32
    %134 = vector.broadcast %cst_36 : f32 to vector<1x128xf32>
    %135 = arith.mulf %134, %125 : vector<1x128xf32>
    %136 = arith.subf %133, %135 : vector<1x128xf32>
    %cst_37 = arith.constant 2.500000e-03 : f32
    %137 = vector.broadcast %cst_37 : f32 to vector<1x128xf32>
    %138 = arith.mulf %137, %128 : vector<1x128xf32>
    %139 = arith.addf %15#3, %138 : vector<1x128xf32>
    %cst_38 = arith.constant 2.500000e-03 : f32
    %140 = vector.broadcast %cst_38 : f32 to vector<1x128xf32>
    %141 = arith.mulf %140, %132 : vector<1x128xf32>
    %142 = arith.addf %15#4, %141 : vector<1x128xf32>
    %cst_39 = arith.constant 2.500000e-03 : f32
    %143 = vector.broadcast %cst_39 : f32 to vector<1x128xf32>
    %144 = arith.mulf %143, %136 : vector<1x128xf32>
    %145 = arith.addf %15#5, %144 : vector<1x128xf32>
    %146 = arith.subf %142, %139 : vector<1x128xf32>
    %cst_40 = arith.constant 1.000000e+01 : f32
    %147 = vector.broadcast %cst_40 : f32 to vector<1x128xf32>
    %148 = arith.mulf %147, %146 : vector<1x128xf32>
    %cst_41 = arith.constant 2.800000e+01 : f32
    %149 = vector.broadcast %cst_41 : f32 to vector<1x128xf32>
    %150 = arith.subf %149, %145 : vector<1x128xf32>
    %151 = arith.mulf %139, %150 : vector<1x128xf32>
    %152 = arith.subf %151, %142 : vector<1x128xf32>
    %153 = arith.mulf %139, %142 : vector<1x128xf32>
    %cst_42 = arith.constant 2.66666675 : f32
    %154 = vector.broadcast %cst_42 : f32 to vector<1x128xf32>
    %155 = arith.mulf %154, %145 : vector<1x128xf32>
    %156 = arith.subf %153, %155 : vector<1x128xf32>
    %cst_43 = arith.constant 2.000000e+00 : f32
    %157 = vector.broadcast %cst_43 : f32 to vector<1x128xf32>
    %158 = arith.mulf %157, %108 : vector<1x128xf32>
    %159 = arith.addf %88, %158 : vector<1x128xf32>
    %cst_44 = arith.constant 2.000000e+00 : f32
    %160 = vector.broadcast %cst_44 : f32 to vector<1x128xf32>
    %161 = arith.mulf %160, %128 : vector<1x128xf32>
    %162 = arith.addf %159, %161 : vector<1x128xf32>
    %163 = arith.addf %162, %148 : vector<1x128xf32>
    %cst_45 = arith.constant 4.16666677E-4 : f32
    %164 = vector.broadcast %cst_45 : f32 to vector<1x128xf32>
    %165 = arith.mulf %164, %163 : vector<1x128xf32>
    %166 = arith.addf %15#3, %165 : vector<1x128xf32>
    %cst_46 = arith.constant 2.000000e+00 : f32
    %167 = vector.broadcast %cst_46 : f32 to vector<1x128xf32>
    %168 = arith.mulf %167, %112 : vector<1x128xf32>
    %169 = arith.addf %92, %168 : vector<1x128xf32>
    %cst_47 = arith.constant 2.000000e+00 : f32
    %170 = vector.broadcast %cst_47 : f32 to vector<1x128xf32>
    %171 = arith.mulf %170, %132 : vector<1x128xf32>
    %172 = arith.addf %169, %171 : vector<1x128xf32>
    %173 = arith.addf %172, %152 : vector<1x128xf32>
    %cst_48 = arith.constant 4.16666677E-4 : f32
    %174 = vector.broadcast %cst_48 : f32 to vector<1x128xf32>
    %175 = arith.mulf %174, %173 : vector<1x128xf32>
    %176 = arith.addf %15#4, %175 : vector<1x128xf32>
    %cst_49 = arith.constant 2.000000e+00 : f32
    %177 = vector.broadcast %cst_49 : f32 to vector<1x128xf32>
    %178 = arith.mulf %177, %116 : vector<1x128xf32>
    %179 = arith.addf %96, %178 : vector<1x128xf32>
    %cst_50 = arith.constant 2.000000e+00 : f32
    %180 = vector.broadcast %cst_50 : f32 to vector<1x128xf32>
    %181 = arith.mulf %180, %136 : vector<1x128xf32>
    %182 = arith.addf %179, %181 : vector<1x128xf32>
    %183 = arith.addf %182, %156 : vector<1x128xf32>
    %cst_51 = arith.constant 4.16666677E-4 : f32
    %184 = vector.broadcast %cst_51 : f32 to vector<1x128xf32>
    %185 = arith.mulf %184, %183 : vector<1x128xf32>
    %186 = arith.addf %15#5, %185 : vector<1x128xf32>
    %c1_i32_52 = arith.constant 1 : i32
    %cst_53 = arith.constant 2.800000e+01 : f32
    %187 = vector.broadcast %cst_53 : f32 to vector<1x128xf32>
    %188 = arith.subf %187, %186 : vector<1x128xf32>
    %cst_54 = arith.constant 0.000000e+00 : f32
    %189 = vector.broadcast %cst_54 : f32 to vector<1x128xf32>
    %190 = arith.subf %189, %166 : vector<1x128xf32>
    %191 = arith.subf %44, %25 : vector<1x128xf32>
    %cst_55 = arith.constant 1.000000e+01 : f32
    %192 = vector.broadcast %cst_55 : f32 to vector<1x128xf32>
    %193 = arith.mulf %192, %191 : vector<1x128xf32>
    %cst_56 = arith.constant 2.500000e-03 : f32
    %194 = vector.broadcast %cst_56 : f32 to vector<1x128xf32>
    %195 = arith.mulf %194, %193 : vector<1x128xf32>
    %196 = arith.addf %25, %195 : vector<1x128xf32>
    %197 = arith.subf %51, %31 : vector<1x128xf32>
    %cst_57 = arith.constant 1.000000e+01 : f32
    %198 = vector.broadcast %cst_57 : f32 to vector<1x128xf32>
    %199 = arith.mulf %198, %197 : vector<1x128xf32>
    %cst_58 = arith.constant 2.500000e-03 : f32
    %200 = vector.broadcast %cst_58 : f32 to vector<1x128xf32>
    %201 = arith.mulf %200, %199 : vector<1x128xf32>
    %202 = arith.addf %31, %201 : vector<1x128xf32>
    %203 = arith.subf %58, %37 : vector<1x128xf32>
    %cst_59 = arith.constant 1.000000e+01 : f32
    %204 = vector.broadcast %cst_59 : f32 to vector<1x128xf32>
    %205 = arith.mulf %204, %203 : vector<1x128xf32>
    %cst_60 = arith.constant 2.500000e-03 : f32
    %206 = vector.broadcast %cst_60 : f32 to vector<1x128xf32>
    %207 = arith.mulf %206, %205 : vector<1x128xf32>
    %208 = arith.addf %37, %207 : vector<1x128xf32>
    %209 = arith.mulf %188, %25 : vector<1x128xf32>
    %210 = arith.subf %209, %44 : vector<1x128xf32>
    %211 = arith.mulf %190, %67 : vector<1x128xf32>
    %212 = arith.addf %210, %211 : vector<1x128xf32>
    %cst_61 = arith.constant 2.500000e-03 : f32
    %213 = vector.broadcast %cst_61 : f32 to vector<1x128xf32>
    %214 = arith.mulf %213, %212 : vector<1x128xf32>
    %215 = arith.addf %44, %214 : vector<1x128xf32>
    %216 = arith.mulf %188, %31 : vector<1x128xf32>
    %217 = arith.subf %216, %51 : vector<1x128xf32>
    %218 = arith.mulf %190, %76 : vector<1x128xf32>
    %219 = arith.addf %217, %218 : vector<1x128xf32>
    %cst_62 = arith.constant 2.500000e-03 : f32
    %220 = vector.broadcast %cst_62 : f32 to vector<1x128xf32>
    %221 = arith.mulf %220, %219 : vector<1x128xf32>
    %222 = arith.addf %51, %221 : vector<1x128xf32>
    %223 = arith.mulf %188, %37 : vector<1x128xf32>
    %224 = arith.subf %223, %58 : vector<1x128xf32>
    %225 = arith.mulf %190, %85 : vector<1x128xf32>
    %226 = arith.addf %224, %225 : vector<1x128xf32>
    %cst_63 = arith.constant 2.500000e-03 : f32
    %227 = vector.broadcast %cst_63 : f32 to vector<1x128xf32>
    %228 = arith.mulf %227, %226 : vector<1x128xf32>
    %229 = arith.addf %58, %228 : vector<1x128xf32>
    %230 = arith.mulf %176, %25 : vector<1x128xf32>
    %231 = arith.mulf %166, %44 : vector<1x128xf32>
    %232 = arith.addf %230, %231 : vector<1x128xf32>
    %cst_64 = arith.constant 2.66666675 : f32
    %233 = vector.broadcast %cst_64 : f32 to vector<1x128xf32>
    %234 = arith.mulf %233, %67 : vector<1x128xf32>
    %235 = arith.subf %232, %234 : vector<1x128xf32>
    %cst_65 = arith.constant 2.500000e-03 : f32
    %236 = vector.broadcast %cst_65 : f32 to vector<1x128xf32>
    %237 = arith.mulf %236, %235 : vector<1x128xf32>
    %238 = arith.addf %67, %237 : vector<1x128xf32>
    %239 = arith.mulf %176, %31 : vector<1x128xf32>
    %240 = arith.mulf %166, %51 : vector<1x128xf32>
    %241 = arith.addf %239, %240 : vector<1x128xf32>
    %cst_66 = arith.constant 2.66666675 : f32
    %242 = vector.broadcast %cst_66 : f32 to vector<1x128xf32>
    %243 = arith.mulf %242, %76 : vector<1x128xf32>
    %244 = arith.subf %241, %243 : vector<1x128xf32>
    %cst_67 = arith.constant 2.500000e-03 : f32
    %245 = vector.broadcast %cst_67 : f32 to vector<1x128xf32>
    %246 = arith.mulf %245, %244 : vector<1x128xf32>
    %247 = arith.addf %76, %246 : vector<1x128xf32>
    %248 = arith.mulf %176, %37 : vector<1x128xf32>
    %249 = arith.mulf %166, %58 : vector<1x128xf32>
    %250 = arith.addf %248, %249 : vector<1x128xf32>
    %cst_68 = arith.constant 2.66666675 : f32
    %251 = vector.broadcast %cst_68 : f32 to vector<1x128xf32>
    %252 = arith.mulf %251, %85 : vector<1x128xf32>
    %253 = arith.subf %250, %252 : vector<1x128xf32>
    %cst_69 = arith.constant 2.500000e-03 : f32
    %254 = vector.broadcast %cst_69 : f32 to vector<1x128xf32>
    %255 = arith.mulf %254, %253 : vector<1x128xf32>
    %256 = arith.addf %85, %255 : vector<1x128xf32>
    %257 = arith.subf %176, %166 : vector<1x128xf32>
    %cst_70 = arith.constant 1.000000e+01 : f32
    %258 = vector.broadcast %cst_70 : f32 to vector<1x128xf32>
    %259 = arith.mulf %258, %257 : vector<1x128xf32>
    %cst_71 = arith.constant 2.800000e+01 : f32
    %260 = vector.broadcast %cst_71 : f32 to vector<1x128xf32>
    %261 = arith.subf %260, %186 : vector<1x128xf32>
    %262 = arith.mulf %166, %261 : vector<1x128xf32>
    %263 = arith.subf %262, %176 : vector<1x128xf32>
    %264 = arith.mulf %166, %176 : vector<1x128xf32>
    %cst_72 = arith.constant 2.66666675 : f32
    %265 = vector.broadcast %cst_72 : f32 to vector<1x128xf32>
    %266 = arith.mulf %265, %186 : vector<1x128xf32>
    %267 = arith.subf %264, %266 : vector<1x128xf32>
    %cst_73 = arith.constant 1.250000e-03 : f32
    %268 = vector.broadcast %cst_73 : f32 to vector<1x128xf32>
    %269 = arith.mulf %268, %259 : vector<1x128xf32>
    %270 = arith.addf %166, %269 : vector<1x128xf32>
    %cst_74 = arith.constant 1.250000e-03 : f32
    %271 = vector.broadcast %cst_74 : f32 to vector<1x128xf32>
    %272 = arith.mulf %271, %263 : vector<1x128xf32>
    %273 = arith.addf %176, %272 : vector<1x128xf32>
    %cst_75 = arith.constant 1.250000e-03 : f32
    %274 = vector.broadcast %cst_75 : f32 to vector<1x128xf32>
    %275 = arith.mulf %274, %267 : vector<1x128xf32>
    %276 = arith.addf %186, %275 : vector<1x128xf32>
    %277 = arith.subf %273, %270 : vector<1x128xf32>
    %cst_76 = arith.constant 1.000000e+01 : f32
    %278 = vector.broadcast %cst_76 : f32 to vector<1x128xf32>
    %279 = arith.mulf %278, %277 : vector<1x128xf32>
    %cst_77 = arith.constant 2.800000e+01 : f32
    %280 = vector.broadcast %cst_77 : f32 to vector<1x128xf32>
    %281 = arith.subf %280, %276 : vector<1x128xf32>
    %282 = arith.mulf %270, %281 : vector<1x128xf32>
    %283 = arith.subf %282, %273 : vector<1x128xf32>
    %284 = arith.mulf %270, %273 : vector<1x128xf32>
    %cst_78 = arith.constant 2.66666675 : f32
    %285 = vector.broadcast %cst_78 : f32 to vector<1x128xf32>
    %286 = arith.mulf %285, %276 : vector<1x128xf32>
    %287 = arith.subf %284, %286 : vector<1x128xf32>
    %cst_79 = arith.constant 1.250000e-03 : f32
    %288 = vector.broadcast %cst_79 : f32 to vector<1x128xf32>
    %289 = arith.mulf %288, %279 : vector<1x128xf32>
    %290 = arith.addf %166, %289 : vector<1x128xf32>
    %cst_80 = arith.constant 1.250000e-03 : f32
    %291 = vector.broadcast %cst_80 : f32 to vector<1x128xf32>
    %292 = arith.mulf %291, %283 : vector<1x128xf32>
    %293 = arith.addf %176, %292 : vector<1x128xf32>
    %cst_81 = arith.constant 1.250000e-03 : f32
    %294 = vector.broadcast %cst_81 : f32 to vector<1x128xf32>
    %295 = arith.mulf %294, %287 : vector<1x128xf32>
    %296 = arith.addf %186, %295 : vector<1x128xf32>
    %297 = arith.subf %293, %290 : vector<1x128xf32>
    %cst_82 = arith.constant 1.000000e+01 : f32
    %298 = vector.broadcast %cst_82 : f32 to vector<1x128xf32>
    %299 = arith.mulf %298, %297 : vector<1x128xf32>
    %cst_83 = arith.constant 2.800000e+01 : f32
    %300 = vector.broadcast %cst_83 : f32 to vector<1x128xf32>
    %301 = arith.subf %300, %296 : vector<1x128xf32>
    %302 = arith.mulf %290, %301 : vector<1x128xf32>
    %303 = arith.subf %302, %293 : vector<1x128xf32>
    %304 = arith.mulf %290, %293 : vector<1x128xf32>
    %cst_84 = arith.constant 2.66666675 : f32
    %305 = vector.broadcast %cst_84 : f32 to vector<1x128xf32>
    %306 = arith.mulf %305, %296 : vector<1x128xf32>
    %307 = arith.subf %304, %306 : vector<1x128xf32>
    %cst_85 = arith.constant 2.500000e-03 : f32
    %308 = vector.broadcast %cst_85 : f32 to vector<1x128xf32>
    %309 = arith.mulf %308, %299 : vector<1x128xf32>
    %310 = arith.addf %166, %309 : vector<1x128xf32>
    %cst_86 = arith.constant 2.500000e-03 : f32
    %311 = vector.broadcast %cst_86 : f32 to vector<1x128xf32>
    %312 = arith.mulf %311, %303 : vector<1x128xf32>
    %313 = arith.addf %176, %312 : vector<1x128xf32>
    %cst_87 = arith.constant 2.500000e-03 : f32
    %314 = vector.broadcast %cst_87 : f32 to vector<1x128xf32>
    %315 = arith.mulf %314, %307 : vector<1x128xf32>
    %316 = arith.addf %186, %315 : vector<1x128xf32>
    %317 = arith.subf %313, %310 : vector<1x128xf32>
    %cst_88 = arith.constant 1.000000e+01 : f32
    %318 = vector.broadcast %cst_88 : f32 to vector<1x128xf32>
    %319 = arith.mulf %318, %317 : vector<1x128xf32>
    %cst_89 = arith.constant 2.800000e+01 : f32
    %320 = vector.broadcast %cst_89 : f32 to vector<1x128xf32>
    %321 = arith.subf %320, %316 : vector<1x128xf32>
    %322 = arith.mulf %310, %321 : vector<1x128xf32>
    %323 = arith.subf %322, %313 : vector<1x128xf32>
    %324 = arith.mulf %310, %313 : vector<1x128xf32>
    %cst_90 = arith.constant 2.66666675 : f32
    %325 = vector.broadcast %cst_90 : f32 to vector<1x128xf32>
    %326 = arith.mulf %325, %316 : vector<1x128xf32>
    %327 = arith.subf %324, %326 : vector<1x128xf32>
    %cst_91 = arith.constant 2.000000e+00 : f32
    %328 = vector.broadcast %cst_91 : f32 to vector<1x128xf32>
    %329 = arith.mulf %328, %279 : vector<1x128xf32>
    %330 = arith.addf %259, %329 : vector<1x128xf32>
    %cst_92 = arith.constant 2.000000e+00 : f32
    %331 = vector.broadcast %cst_92 : f32 to vector<1x128xf32>
    %332 = arith.mulf %331, %299 : vector<1x128xf32>
    %333 = arith.addf %330, %332 : vector<1x128xf32>
    %334 = arith.addf %333, %319 : vector<1x128xf32>
    %cst_93 = arith.constant 4.16666677E-4 : f32
    %335 = vector.broadcast %cst_93 : f32 to vector<1x128xf32>
    %336 = arith.mulf %335, %334 : vector<1x128xf32>
    %337 = arith.addf %166, %336 : vector<1x128xf32>
    %cst_94 = arith.constant 2.000000e+00 : f32
    %338 = vector.broadcast %cst_94 : f32 to vector<1x128xf32>
    %339 = arith.mulf %338, %283 : vector<1x128xf32>
    %340 = arith.addf %263, %339 : vector<1x128xf32>
    %cst_95 = arith.constant 2.000000e+00 : f32
    %341 = vector.broadcast %cst_95 : f32 to vector<1x128xf32>
    %342 = arith.mulf %341, %303 : vector<1x128xf32>
    %343 = arith.addf %340, %342 : vector<1x128xf32>
    %344 = arith.addf %343, %323 : vector<1x128xf32>
    %cst_96 = arith.constant 4.16666677E-4 : f32
    %345 = vector.broadcast %cst_96 : f32 to vector<1x128xf32>
    %346 = arith.mulf %345, %344 : vector<1x128xf32>
    %347 = arith.addf %176, %346 : vector<1x128xf32>
    %cst_97 = arith.constant 2.000000e+00 : f32
    %348 = vector.broadcast %cst_97 : f32 to vector<1x128xf32>
    %349 = arith.mulf %348, %287 : vector<1x128xf32>
    %350 = arith.addf %267, %349 : vector<1x128xf32>
    %cst_98 = arith.constant 2.000000e+00 : f32
    %351 = vector.broadcast %cst_98 : f32 to vector<1x128xf32>
    %352 = arith.mulf %351, %307 : vector<1x128xf32>
    %353 = arith.addf %350, %352 : vector<1x128xf32>
    %354 = arith.addf %353, %327 : vector<1x128xf32>
    %cst_99 = arith.constant 4.16666677E-4 : f32
    %355 = vector.broadcast %cst_99 : f32 to vector<1x128xf32>
    %356 = arith.mulf %355, %354 : vector<1x128xf32>
    %357 = arith.addf %186, %356 : vector<1x128xf32>
    %c2_i32 = arith.constant 2 : i32
    %cst_100 = arith.constant 2.800000e+01 : f32
    %358 = vector.broadcast %cst_100 : f32 to vector<1x128xf32>
    %359 = arith.subf %358, %357 : vector<1x128xf32>
    %cst_101 = arith.constant 0.000000e+00 : f32
    %360 = vector.broadcast %cst_101 : f32 to vector<1x128xf32>
    %361 = arith.subf %360, %337 : vector<1x128xf32>
    %362 = arith.subf %215, %196 : vector<1x128xf32>
    %cst_102 = arith.constant 1.000000e+01 : f32
    %363 = vector.broadcast %cst_102 : f32 to vector<1x128xf32>
    %364 = arith.mulf %363, %362 : vector<1x128xf32>
    %cst_103 = arith.constant 2.500000e-03 : f32
    %365 = vector.broadcast %cst_103 : f32 to vector<1x128xf32>
    %366 = arith.mulf %365, %364 : vector<1x128xf32>
    %367 = arith.addf %196, %366 : vector<1x128xf32>
    %368 = arith.subf %222, %202 : vector<1x128xf32>
    %cst_104 = arith.constant 1.000000e+01 : f32
    %369 = vector.broadcast %cst_104 : f32 to vector<1x128xf32>
    %370 = arith.mulf %369, %368 : vector<1x128xf32>
    %cst_105 = arith.constant 2.500000e-03 : f32
    %371 = vector.broadcast %cst_105 : f32 to vector<1x128xf32>
    %372 = arith.mulf %371, %370 : vector<1x128xf32>
    %373 = arith.addf %202, %372 : vector<1x128xf32>
    %374 = arith.subf %229, %208 : vector<1x128xf32>
    %cst_106 = arith.constant 1.000000e+01 : f32
    %375 = vector.broadcast %cst_106 : f32 to vector<1x128xf32>
    %376 = arith.mulf %375, %374 : vector<1x128xf32>
    %cst_107 = arith.constant 2.500000e-03 : f32
    %377 = vector.broadcast %cst_107 : f32 to vector<1x128xf32>
    %378 = arith.mulf %377, %376 : vector<1x128xf32>
    %379 = arith.addf %208, %378 : vector<1x128xf32>
    %380 = arith.mulf %359, %196 : vector<1x128xf32>
    %381 = arith.subf %380, %215 : vector<1x128xf32>
    %382 = arith.mulf %361, %238 : vector<1x128xf32>
    %383 = arith.addf %381, %382 : vector<1x128xf32>
    %cst_108 = arith.constant 2.500000e-03 : f32
    %384 = vector.broadcast %cst_108 : f32 to vector<1x128xf32>
    %385 = arith.mulf %384, %383 : vector<1x128xf32>
    %386 = arith.addf %215, %385 : vector<1x128xf32>
    %387 = arith.mulf %359, %202 : vector<1x128xf32>
    %388 = arith.subf %387, %222 : vector<1x128xf32>
    %389 = arith.mulf %361, %247 : vector<1x128xf32>
    %390 = arith.addf %388, %389 : vector<1x128xf32>
    %cst_109 = arith.constant 2.500000e-03 : f32
    %391 = vector.broadcast %cst_109 : f32 to vector<1x128xf32>
    %392 = arith.mulf %391, %390 : vector<1x128xf32>
    %393 = arith.addf %222, %392 : vector<1x128xf32>
    %394 = arith.mulf %359, %208 : vector<1x128xf32>
    %395 = arith.subf %394, %229 : vector<1x128xf32>
    %396 = arith.mulf %361, %256 : vector<1x128xf32>
    %397 = arith.addf %395, %396 : vector<1x128xf32>
    %cst_110 = arith.constant 2.500000e-03 : f32
    %398 = vector.broadcast %cst_110 : f32 to vector<1x128xf32>
    %399 = arith.mulf %398, %397 : vector<1x128xf32>
    %400 = arith.addf %229, %399 : vector<1x128xf32>
    %401 = arith.mulf %347, %196 : vector<1x128xf32>
    %402 = arith.mulf %337, %215 : vector<1x128xf32>
    %403 = arith.addf %401, %402 : vector<1x128xf32>
    %cst_111 = arith.constant 2.66666675 : f32
    %404 = vector.broadcast %cst_111 : f32 to vector<1x128xf32>
    %405 = arith.mulf %404, %238 : vector<1x128xf32>
    %406 = arith.subf %403, %405 : vector<1x128xf32>
    %cst_112 = arith.constant 2.500000e-03 : f32
    %407 = vector.broadcast %cst_112 : f32 to vector<1x128xf32>
    %408 = arith.mulf %407, %406 : vector<1x128xf32>
    %409 = arith.addf %238, %408 : vector<1x128xf32>
    %410 = arith.mulf %347, %202 : vector<1x128xf32>
    %411 = arith.mulf %337, %222 : vector<1x128xf32>
    %412 = arith.addf %410, %411 : vector<1x128xf32>
    %cst_113 = arith.constant 2.66666675 : f32
    %413 = vector.broadcast %cst_113 : f32 to vector<1x128xf32>
    %414 = arith.mulf %413, %247 : vector<1x128xf32>
    %415 = arith.subf %412, %414 : vector<1x128xf32>
    %cst_114 = arith.constant 2.500000e-03 : f32
    %416 = vector.broadcast %cst_114 : f32 to vector<1x128xf32>
    %417 = arith.mulf %416, %415 : vector<1x128xf32>
    %418 = arith.addf %247, %417 : vector<1x128xf32>
    %419 = arith.mulf %347, %208 : vector<1x128xf32>
    %420 = arith.mulf %337, %229 : vector<1x128xf32>
    %421 = arith.addf %419, %420 : vector<1x128xf32>
    %cst_115 = arith.constant 2.66666675 : f32
    %422 = vector.broadcast %cst_115 : f32 to vector<1x128xf32>
    %423 = arith.mulf %422, %256 : vector<1x128xf32>
    %424 = arith.subf %421, %423 : vector<1x128xf32>
    %cst_116 = arith.constant 2.500000e-03 : f32
    %425 = vector.broadcast %cst_116 : f32 to vector<1x128xf32>
    %426 = arith.mulf %425, %424 : vector<1x128xf32>
    %427 = arith.addf %256, %426 : vector<1x128xf32>
    %428 = arith.subf %347, %337 : vector<1x128xf32>
    %cst_117 = arith.constant 1.000000e+01 : f32
    %429 = vector.broadcast %cst_117 : f32 to vector<1x128xf32>
    %430 = arith.mulf %429, %428 : vector<1x128xf32>
    %cst_118 = arith.constant 2.800000e+01 : f32
    %431 = vector.broadcast %cst_118 : f32 to vector<1x128xf32>
    %432 = arith.subf %431, %357 : vector<1x128xf32>
    %433 = arith.mulf %337, %432 : vector<1x128xf32>
    %434 = arith.subf %433, %347 : vector<1x128xf32>
    %435 = arith.mulf %337, %347 : vector<1x128xf32>
    %cst_119 = arith.constant 2.66666675 : f32
    %436 = vector.broadcast %cst_119 : f32 to vector<1x128xf32>
    %437 = arith.mulf %436, %357 : vector<1x128xf32>
    %438 = arith.subf %435, %437 : vector<1x128xf32>
    %cst_120 = arith.constant 1.250000e-03 : f32
    %439 = vector.broadcast %cst_120 : f32 to vector<1x128xf32>
    %440 = arith.mulf %439, %430 : vector<1x128xf32>
    %441 = arith.addf %337, %440 : vector<1x128xf32>
    %cst_121 = arith.constant 1.250000e-03 : f32
    %442 = vector.broadcast %cst_121 : f32 to vector<1x128xf32>
    %443 = arith.mulf %442, %434 : vector<1x128xf32>
    %444 = arith.addf %347, %443 : vector<1x128xf32>
    %cst_122 = arith.constant 1.250000e-03 : f32
    %445 = vector.broadcast %cst_122 : f32 to vector<1x128xf32>
    %446 = arith.mulf %445, %438 : vector<1x128xf32>
    %447 = arith.addf %357, %446 : vector<1x128xf32>
    %448 = arith.subf %444, %441 : vector<1x128xf32>
    %cst_123 = arith.constant 1.000000e+01 : f32
    %449 = vector.broadcast %cst_123 : f32 to vector<1x128xf32>
    %450 = arith.mulf %449, %448 : vector<1x128xf32>
    %cst_124 = arith.constant 2.800000e+01 : f32
    %451 = vector.broadcast %cst_124 : f32 to vector<1x128xf32>
    %452 = arith.subf %451, %447 : vector<1x128xf32>
    %453 = arith.mulf %441, %452 : vector<1x128xf32>
    %454 = arith.subf %453, %444 : vector<1x128xf32>
    %455 = arith.mulf %441, %444 : vector<1x128xf32>
    %cst_125 = arith.constant 2.66666675 : f32
    %456 = vector.broadcast %cst_125 : f32 to vector<1x128xf32>
    %457 = arith.mulf %456, %447 : vector<1x128xf32>
    %458 = arith.subf %455, %457 : vector<1x128xf32>
    %cst_126 = arith.constant 1.250000e-03 : f32
    %459 = vector.broadcast %cst_126 : f32 to vector<1x128xf32>
    %460 = arith.mulf %459, %450 : vector<1x128xf32>
    %461 = arith.addf %337, %460 : vector<1x128xf32>
    %cst_127 = arith.constant 1.250000e-03 : f32
    %462 = vector.broadcast %cst_127 : f32 to vector<1x128xf32>
    %463 = arith.mulf %462, %454 : vector<1x128xf32>
    %464 = arith.addf %347, %463 : vector<1x128xf32>
    %cst_128 = arith.constant 1.250000e-03 : f32
    %465 = vector.broadcast %cst_128 : f32 to vector<1x128xf32>
    %466 = arith.mulf %465, %458 : vector<1x128xf32>
    %467 = arith.addf %357, %466 : vector<1x128xf32>
    %468 = arith.subf %464, %461 : vector<1x128xf32>
    %cst_129 = arith.constant 1.000000e+01 : f32
    %469 = vector.broadcast %cst_129 : f32 to vector<1x128xf32>
    %470 = arith.mulf %469, %468 : vector<1x128xf32>
    %cst_130 = arith.constant 2.800000e+01 : f32
    %471 = vector.broadcast %cst_130 : f32 to vector<1x128xf32>
    %472 = arith.subf %471, %467 : vector<1x128xf32>
    %473 = arith.mulf %461, %472 : vector<1x128xf32>
    %474 = arith.subf %473, %464 : vector<1x128xf32>
    %475 = arith.mulf %461, %464 : vector<1x128xf32>
    %cst_131 = arith.constant 2.66666675 : f32
    %476 = vector.broadcast %cst_131 : f32 to vector<1x128xf32>
    %477 = arith.mulf %476, %467 : vector<1x128xf32>
    %478 = arith.subf %475, %477 : vector<1x128xf32>
    %cst_132 = arith.constant 2.500000e-03 : f32
    %479 = vector.broadcast %cst_132 : f32 to vector<1x128xf32>
    %480 = arith.mulf %479, %470 : vector<1x128xf32>
    %481 = arith.addf %337, %480 : vector<1x128xf32>
    %cst_133 = arith.constant 2.500000e-03 : f32
    %482 = vector.broadcast %cst_133 : f32 to vector<1x128xf32>
    %483 = arith.mulf %482, %474 : vector<1x128xf32>
    %484 = arith.addf %347, %483 : vector<1x128xf32>
    %cst_134 = arith.constant 2.500000e-03 : f32
    %485 = vector.broadcast %cst_134 : f32 to vector<1x128xf32>
    %486 = arith.mulf %485, %478 : vector<1x128xf32>
    %487 = arith.addf %357, %486 : vector<1x128xf32>
    %488 = arith.subf %484, %481 : vector<1x128xf32>
    %cst_135 = arith.constant 1.000000e+01 : f32
    %489 = vector.broadcast %cst_135 : f32 to vector<1x128xf32>
    %490 = arith.mulf %489, %488 : vector<1x128xf32>
    %cst_136 = arith.constant 2.800000e+01 : f32
    %491 = vector.broadcast %cst_136 : f32 to vector<1x128xf32>
    %492 = arith.subf %491, %487 : vector<1x128xf32>
    %493 = arith.mulf %481, %492 : vector<1x128xf32>
    %494 = arith.subf %493, %484 : vector<1x128xf32>
    %495 = arith.mulf %481, %484 : vector<1x128xf32>
    %cst_137 = arith.constant 2.66666675 : f32
    %496 = vector.broadcast %cst_137 : f32 to vector<1x128xf32>
    %497 = arith.mulf %496, %487 : vector<1x128xf32>
    %498 = arith.subf %495, %497 : vector<1x128xf32>
    %cst_138 = arith.constant 2.000000e+00 : f32
    %499 = vector.broadcast %cst_138 : f32 to vector<1x128xf32>
    %500 = arith.mulf %499, %450 : vector<1x128xf32>
    %501 = arith.addf %430, %500 : vector<1x128xf32>
    %cst_139 = arith.constant 2.000000e+00 : f32
    %502 = vector.broadcast %cst_139 : f32 to vector<1x128xf32>
    %503 = arith.mulf %502, %470 : vector<1x128xf32>
    %504 = arith.addf %501, %503 : vector<1x128xf32>
    %505 = arith.addf %504, %490 : vector<1x128xf32>
    %cst_140 = arith.constant 4.16666677E-4 : f32
    %506 = vector.broadcast %cst_140 : f32 to vector<1x128xf32>
    %507 = arith.mulf %506, %505 : vector<1x128xf32>
    %508 = arith.addf %337, %507 : vector<1x128xf32>
    %cst_141 = arith.constant 2.000000e+00 : f32
    %509 = vector.broadcast %cst_141 : f32 to vector<1x128xf32>
    %510 = arith.mulf %509, %454 : vector<1x128xf32>
    %511 = arith.addf %434, %510 : vector<1x128xf32>
    %cst_142 = arith.constant 2.000000e+00 : f32
    %512 = vector.broadcast %cst_142 : f32 to vector<1x128xf32>
    %513 = arith.mulf %512, %474 : vector<1x128xf32>
    %514 = arith.addf %511, %513 : vector<1x128xf32>
    %515 = arith.addf %514, %494 : vector<1x128xf32>
    %cst_143 = arith.constant 4.16666677E-4 : f32
    %516 = vector.broadcast %cst_143 : f32 to vector<1x128xf32>
    %517 = arith.mulf %516, %515 : vector<1x128xf32>
    %518 = arith.addf %347, %517 : vector<1x128xf32>
    %cst_144 = arith.constant 2.000000e+00 : f32
    %519 = vector.broadcast %cst_144 : f32 to vector<1x128xf32>
    %520 = arith.mulf %519, %458 : vector<1x128xf32>
    %521 = arith.addf %438, %520 : vector<1x128xf32>
    %cst_145 = arith.constant 2.000000e+00 : f32
    %522 = vector.broadcast %cst_145 : f32 to vector<1x128xf32>
    %523 = arith.mulf %522, %478 : vector<1x128xf32>
    %524 = arith.addf %521, %523 : vector<1x128xf32>
    %525 = arith.addf %524, %498 : vector<1x128xf32>
    %cst_146 = arith.constant 4.16666677E-4 : f32
    %526 = vector.broadcast %cst_146 : f32 to vector<1x128xf32>
    %527 = arith.mulf %526, %525 : vector<1x128xf32>
    %528 = arith.addf %357, %527 : vector<1x128xf32>
    %c3_i32 = arith.constant 3 : i32
    %cst_147 = arith.constant 2.800000e+01 : f32
    %529 = vector.broadcast %cst_147 : f32 to vector<1x128xf32>
    %530 = arith.subf %529, %528 : vector<1x128xf32>
    %cst_148 = arith.constant 0.000000e+00 : f32
    %531 = vector.broadcast %cst_148 : f32 to vector<1x128xf32>
    %532 = arith.subf %531, %508 : vector<1x128xf32>
    %533 = arith.subf %386, %367 : vector<1x128xf32>
    %cst_149 = arith.constant 1.000000e+01 : f32
    %534 = vector.broadcast %cst_149 : f32 to vector<1x128xf32>
    %535 = arith.mulf %534, %533 : vector<1x128xf32>
    %cst_150 = arith.constant 2.500000e-03 : f32
    %536 = vector.broadcast %cst_150 : f32 to vector<1x128xf32>
    %537 = arith.mulf %536, %535 : vector<1x128xf32>
    %538 = arith.addf %367, %537 : vector<1x128xf32>
    %539 = arith.subf %393, %373 : vector<1x128xf32>
    %cst_151 = arith.constant 1.000000e+01 : f32
    %540 = vector.broadcast %cst_151 : f32 to vector<1x128xf32>
    %541 = arith.mulf %540, %539 : vector<1x128xf32>
    %cst_152 = arith.constant 2.500000e-03 : f32
    %542 = vector.broadcast %cst_152 : f32 to vector<1x128xf32>
    %543 = arith.mulf %542, %541 : vector<1x128xf32>
    %544 = arith.addf %373, %543 : vector<1x128xf32>
    %545 = arith.subf %400, %379 : vector<1x128xf32>
    %cst_153 = arith.constant 1.000000e+01 : f32
    %546 = vector.broadcast %cst_153 : f32 to vector<1x128xf32>
    %547 = arith.mulf %546, %545 : vector<1x128xf32>
    %cst_154 = arith.constant 2.500000e-03 : f32
    %548 = vector.broadcast %cst_154 : f32 to vector<1x128xf32>
    %549 = arith.mulf %548, %547 : vector<1x128xf32>
    %550 = arith.addf %379, %549 : vector<1x128xf32>
    %551 = arith.mulf %530, %367 : vector<1x128xf32>
    %552 = arith.subf %551, %386 : vector<1x128xf32>
    %553 = arith.mulf %532, %409 : vector<1x128xf32>
    %554 = arith.addf %552, %553 : vector<1x128xf32>
    %cst_155 = arith.constant 2.500000e-03 : f32
    %555 = vector.broadcast %cst_155 : f32 to vector<1x128xf32>
    %556 = arith.mulf %555, %554 : vector<1x128xf32>
    %557 = arith.addf %386, %556 : vector<1x128xf32>
    %558 = arith.mulf %530, %373 : vector<1x128xf32>
    %559 = arith.subf %558, %393 : vector<1x128xf32>
    %560 = arith.mulf %532, %418 : vector<1x128xf32>
    %561 = arith.addf %559, %560 : vector<1x128xf32>
    %cst_156 = arith.constant 2.500000e-03 : f32
    %562 = vector.broadcast %cst_156 : f32 to vector<1x128xf32>
    %563 = arith.mulf %562, %561 : vector<1x128xf32>
    %564 = arith.addf %393, %563 : vector<1x128xf32>
    %565 = arith.mulf %530, %379 : vector<1x128xf32>
    %566 = arith.subf %565, %400 : vector<1x128xf32>
    %567 = arith.mulf %532, %427 : vector<1x128xf32>
    %568 = arith.addf %566, %567 : vector<1x128xf32>
    %cst_157 = arith.constant 2.500000e-03 : f32
    %569 = vector.broadcast %cst_157 : f32 to vector<1x128xf32>
    %570 = arith.mulf %569, %568 : vector<1x128xf32>
    %571 = arith.addf %400, %570 : vector<1x128xf32>
    %572 = arith.mulf %518, %367 : vector<1x128xf32>
    %573 = arith.mulf %508, %386 : vector<1x128xf32>
    %574 = arith.addf %572, %573 : vector<1x128xf32>
    %cst_158 = arith.constant 2.66666675 : f32
    %575 = vector.broadcast %cst_158 : f32 to vector<1x128xf32>
    %576 = arith.mulf %575, %409 : vector<1x128xf32>
    %577 = arith.subf %574, %576 : vector<1x128xf32>
    %cst_159 = arith.constant 2.500000e-03 : f32
    %578 = vector.broadcast %cst_159 : f32 to vector<1x128xf32>
    %579 = arith.mulf %578, %577 : vector<1x128xf32>
    %580 = arith.addf %409, %579 : vector<1x128xf32>
    %581 = arith.mulf %518, %373 : vector<1x128xf32>
    %582 = arith.mulf %508, %393 : vector<1x128xf32>
    %583 = arith.addf %581, %582 : vector<1x128xf32>
    %cst_160 = arith.constant 2.66666675 : f32
    %584 = vector.broadcast %cst_160 : f32 to vector<1x128xf32>
    %585 = arith.mulf %584, %418 : vector<1x128xf32>
    %586 = arith.subf %583, %585 : vector<1x128xf32>
    %cst_161 = arith.constant 2.500000e-03 : f32
    %587 = vector.broadcast %cst_161 : f32 to vector<1x128xf32>
    %588 = arith.mulf %587, %586 : vector<1x128xf32>
    %589 = arith.addf %418, %588 : vector<1x128xf32>
    %590 = arith.mulf %518, %379 : vector<1x128xf32>
    %591 = arith.mulf %508, %400 : vector<1x128xf32>
    %592 = arith.addf %590, %591 : vector<1x128xf32>
    %cst_162 = arith.constant 2.66666675 : f32
    %593 = vector.broadcast %cst_162 : f32 to vector<1x128xf32>
    %594 = arith.mulf %593, %427 : vector<1x128xf32>
    %595 = arith.subf %592, %594 : vector<1x128xf32>
    %cst_163 = arith.constant 2.500000e-03 : f32
    %596 = vector.broadcast %cst_163 : f32 to vector<1x128xf32>
    %597 = arith.mulf %596, %595 : vector<1x128xf32>
    %598 = arith.addf %427, %597 : vector<1x128xf32>
    %599 = arith.subf %518, %508 : vector<1x128xf32>
    %cst_164 = arith.constant 1.000000e+01 : f32
    %600 = vector.broadcast %cst_164 : f32 to vector<1x128xf32>
    %601 = arith.mulf %600, %599 : vector<1x128xf32>
    %cst_165 = arith.constant 2.800000e+01 : f32
    %602 = vector.broadcast %cst_165 : f32 to vector<1x128xf32>
    %603 = arith.subf %602, %528 : vector<1x128xf32>
    %604 = arith.mulf %508, %603 : vector<1x128xf32>
    %605 = arith.subf %604, %518 : vector<1x128xf32>
    %606 = arith.mulf %508, %518 : vector<1x128xf32>
    %cst_166 = arith.constant 2.66666675 : f32
    %607 = vector.broadcast %cst_166 : f32 to vector<1x128xf32>
    %608 = arith.mulf %607, %528 : vector<1x128xf32>
    %609 = arith.subf %606, %608 : vector<1x128xf32>
    %cst_167 = arith.constant 1.250000e-03 : f32
    %610 = vector.broadcast %cst_167 : f32 to vector<1x128xf32>
    %611 = arith.mulf %610, %601 : vector<1x128xf32>
    %612 = arith.addf %508, %611 : vector<1x128xf32>
    %cst_168 = arith.constant 1.250000e-03 : f32
    %613 = vector.broadcast %cst_168 : f32 to vector<1x128xf32>
    %614 = arith.mulf %613, %605 : vector<1x128xf32>
    %615 = arith.addf %518, %614 : vector<1x128xf32>
    %cst_169 = arith.constant 1.250000e-03 : f32
    %616 = vector.broadcast %cst_169 : f32 to vector<1x128xf32>
    %617 = arith.mulf %616, %609 : vector<1x128xf32>
    %618 = arith.addf %528, %617 : vector<1x128xf32>
    %619 = arith.subf %615, %612 : vector<1x128xf32>
    %cst_170 = arith.constant 1.000000e+01 : f32
    %620 = vector.broadcast %cst_170 : f32 to vector<1x128xf32>
    %621 = arith.mulf %620, %619 : vector<1x128xf32>
    %cst_171 = arith.constant 2.800000e+01 : f32
    %622 = vector.broadcast %cst_171 : f32 to vector<1x128xf32>
    %623 = arith.subf %622, %618 : vector<1x128xf32>
    %624 = arith.mulf %612, %623 : vector<1x128xf32>
    %625 = arith.subf %624, %615 : vector<1x128xf32>
    %626 = arith.mulf %612, %615 : vector<1x128xf32>
    %cst_172 = arith.constant 2.66666675 : f32
    %627 = vector.broadcast %cst_172 : f32 to vector<1x128xf32>
    %628 = arith.mulf %627, %618 : vector<1x128xf32>
    %629 = arith.subf %626, %628 : vector<1x128xf32>
    %cst_173 = arith.constant 1.250000e-03 : f32
    %630 = vector.broadcast %cst_173 : f32 to vector<1x128xf32>
    %631 = arith.mulf %630, %621 : vector<1x128xf32>
    %632 = arith.addf %508, %631 : vector<1x128xf32>
    %cst_174 = arith.constant 1.250000e-03 : f32
    %633 = vector.broadcast %cst_174 : f32 to vector<1x128xf32>
    %634 = arith.mulf %633, %625 : vector<1x128xf32>
    %635 = arith.addf %518, %634 : vector<1x128xf32>
    %cst_175 = arith.constant 1.250000e-03 : f32
    %636 = vector.broadcast %cst_175 : f32 to vector<1x128xf32>
    %637 = arith.mulf %636, %629 : vector<1x128xf32>
    %638 = arith.addf %528, %637 : vector<1x128xf32>
    %639 = arith.subf %635, %632 : vector<1x128xf32>
    %cst_176 = arith.constant 1.000000e+01 : f32
    %640 = vector.broadcast %cst_176 : f32 to vector<1x128xf32>
    %641 = arith.mulf %640, %639 : vector<1x128xf32>
    %cst_177 = arith.constant 2.800000e+01 : f32
    %642 = vector.broadcast %cst_177 : f32 to vector<1x128xf32>
    %643 = arith.subf %642, %638 : vector<1x128xf32>
    %644 = arith.mulf %632, %643 : vector<1x128xf32>
    %645 = arith.subf %644, %635 : vector<1x128xf32>
    %646 = arith.mulf %632, %635 : vector<1x128xf32>
    %cst_178 = arith.constant 2.66666675 : f32
    %647 = vector.broadcast %cst_178 : f32 to vector<1x128xf32>
    %648 = arith.mulf %647, %638 : vector<1x128xf32>
    %649 = arith.subf %646, %648 : vector<1x128xf32>
    %cst_179 = arith.constant 2.500000e-03 : f32
    %650 = vector.broadcast %cst_179 : f32 to vector<1x128xf32>
    %651 = arith.mulf %650, %641 : vector<1x128xf32>
    %652 = arith.addf %508, %651 : vector<1x128xf32>
    %cst_180 = arith.constant 2.500000e-03 : f32
    %653 = vector.broadcast %cst_180 : f32 to vector<1x128xf32>
    %654 = arith.mulf %653, %645 : vector<1x128xf32>
    %655 = arith.addf %518, %654 : vector<1x128xf32>
    %cst_181 = arith.constant 2.500000e-03 : f32
    %656 = vector.broadcast %cst_181 : f32 to vector<1x128xf32>
    %657 = arith.mulf %656, %649 : vector<1x128xf32>
    %658 = arith.addf %528, %657 : vector<1x128xf32>
    %659 = arith.subf %655, %652 : vector<1x128xf32>
    %cst_182 = arith.constant 1.000000e+01 : f32
    %660 = vector.broadcast %cst_182 : f32 to vector<1x128xf32>
    %661 = arith.mulf %660, %659 : vector<1x128xf32>
    %cst_183 = arith.constant 2.800000e+01 : f32
    %662 = vector.broadcast %cst_183 : f32 to vector<1x128xf32>
    %663 = arith.subf %662, %658 : vector<1x128xf32>
    %664 = arith.mulf %652, %663 : vector<1x128xf32>
    %665 = arith.subf %664, %655 : vector<1x128xf32>
    %666 = arith.mulf %652, %655 : vector<1x128xf32>
    %cst_184 = arith.constant 2.66666675 : f32
    %667 = vector.broadcast %cst_184 : f32 to vector<1x128xf32>
    %668 = arith.mulf %667, %658 : vector<1x128xf32>
    %669 = arith.subf %666, %668 : vector<1x128xf32>
    %cst_185 = arith.constant 2.000000e+00 : f32
    %670 = vector.broadcast %cst_185 : f32 to vector<1x128xf32>
    %671 = arith.mulf %670, %621 : vector<1x128xf32>
    %672 = arith.addf %601, %671 : vector<1x128xf32>
    %cst_186 = arith.constant 2.000000e+00 : f32
    %673 = vector.broadcast %cst_186 : f32 to vector<1x128xf32>
    %674 = arith.mulf %673, %641 : vector<1x128xf32>
    %675 = arith.addf %672, %674 : vector<1x128xf32>
    %676 = arith.addf %675, %661 : vector<1x128xf32>
    %cst_187 = arith.constant 4.16666677E-4 : f32
    %677 = vector.broadcast %cst_187 : f32 to vector<1x128xf32>
    %678 = arith.mulf %677, %676 : vector<1x128xf32>
    %679 = arith.addf %508, %678 : vector<1x128xf32>
    %cst_188 = arith.constant 2.000000e+00 : f32
    %680 = vector.broadcast %cst_188 : f32 to vector<1x128xf32>
    %681 = arith.mulf %680, %625 : vector<1x128xf32>
    %682 = arith.addf %605, %681 : vector<1x128xf32>
    %cst_189 = arith.constant 2.000000e+00 : f32
    %683 = vector.broadcast %cst_189 : f32 to vector<1x128xf32>
    %684 = arith.mulf %683, %645 : vector<1x128xf32>
    %685 = arith.addf %682, %684 : vector<1x128xf32>
    %686 = arith.addf %685, %665 : vector<1x128xf32>
    %cst_190 = arith.constant 4.16666677E-4 : f32
    %687 = vector.broadcast %cst_190 : f32 to vector<1x128xf32>
    %688 = arith.mulf %687, %686 : vector<1x128xf32>
    %689 = arith.addf %518, %688 : vector<1x128xf32>
    %cst_191 = arith.constant 2.000000e+00 : f32
    %690 = vector.broadcast %cst_191 : f32 to vector<1x128xf32>
    %691 = arith.mulf %690, %629 : vector<1x128xf32>
    %692 = arith.addf %609, %691 : vector<1x128xf32>
    %cst_192 = arith.constant 2.000000e+00 : f32
    %693 = vector.broadcast %cst_192 : f32 to vector<1x128xf32>
    %694 = arith.mulf %693, %649 : vector<1x128xf32>
    %695 = arith.addf %692, %694 : vector<1x128xf32>
    %696 = arith.addf %695, %669 : vector<1x128xf32>
    %cst_193 = arith.constant 4.16666677E-4 : f32
    %697 = vector.broadcast %cst_193 : f32 to vector<1x128xf32>
    %698 = arith.mulf %697, %696 : vector<1x128xf32>
    %699 = arith.addf %528, %698 : vector<1x128xf32>
    %c0_i32_194 = arith.constant 0 : i32
    %c128_i32 = arith.constant 128 : i32
    %700 = arith.addi %c0_i32_194, %c128_i32 : i32
    %c1_i32_195 = arith.constant 1 : i32
    %701:15 = scf.for %arg2 = %c0_i32_194 to %700 step %c1_i32_195 iter_args(%arg3 = %3, %arg4 = %2, %arg5 = %2, %arg6 = %2, %arg7 = %3, %arg8 = %2, %arg9 = %2, %arg10 = %2, %arg11 = %3, %arg12 = %2, %arg13 = %2, %arg14 = %2, %arg15 = %2, %arg16 = %2, %arg17 = %2) -> (vector<1x1xf32>, vector<1x1xf32>, vector<1x1xf32>, vector<1x1xf32>, vector<1x1xf32>, vector<1x1xf32>, vector<1x1xf32>, vector<1x1xf32>, vector<1x1xf32>, vector<1x1xf32>, vector<1x1xf32>, vector<1x1xf32>, vector<1x1xf32>, vector<1x1xf32>, vector<1x1xf32>)  : i32 {
      %710 = vector.broadcast %arg2 : i32 to vector<1x128xi32>
      %711 = arith.cmpi eq, %4, %710 : vector<1x128xi32>
      %cst_202 = arith.constant 0.000000e+00 : f32
      %712 = vector.broadcast %cst_202 : f32 to vector<1x128xf32>
      %713 = arith.select %711, %538, %712 : vector<1x128xi1>, vector<1x128xf32>
      %cst_203 = arith.constant dense<0.000000e+00> : vector<1xf32>
      %714 = vector.multi_reduction <add>, %713, %cst_203 [1] : vector<1x128xf32> to vector<1xf32>
      %715 = vector.shape_cast %714 : vector<1xf32> to vector<1x1xf32>
      %716 = vector.broadcast %arg2 : i32 to vector<1x128xi32>
      %717 = arith.cmpi eq, %4, %716 : vector<1x128xi32>
      %cst_204 = arith.constant 0.000000e+00 : f32
      %718 = vector.broadcast %cst_204 : f32 to vector<1x128xf32>
      %719 = arith.select %717, %544, %718 : vector<1x128xi1>, vector<1x128xf32>
      %cst_205 = arith.constant dense<0.000000e+00> : vector<1xf32>
      %720 = vector.multi_reduction <add>, %719, %cst_205 [1] : vector<1x128xf32> to vector<1xf32>
      %721 = vector.shape_cast %720 : vector<1xf32> to vector<1x1xf32>
      %722 = vector.broadcast %arg2 : i32 to vector<1x128xi32>
      %723 = arith.cmpi eq, %4, %722 : vector<1x128xi32>
      %cst_206 = arith.constant 0.000000e+00 : f32
      %724 = vector.broadcast %cst_206 : f32 to vector<1x128xf32>
      %725 = arith.select %723, %550, %724 : vector<1x128xi1>, vector<1x128xf32>
      %cst_207 = arith.constant dense<0.000000e+00> : vector<1xf32>
      %726 = vector.multi_reduction <add>, %725, %cst_207 [1] : vector<1x128xf32> to vector<1xf32>
      %727 = vector.shape_cast %726 : vector<1xf32> to vector<1x1xf32>
      %728 = vector.broadcast %arg2 : i32 to vector<1x128xi32>
      %729 = arith.cmpi eq, %4, %728 : vector<1x128xi32>
      %cst_208 = arith.constant 0.000000e+00 : f32
      %730 = vector.broadcast %cst_208 : f32 to vector<1x128xf32>
      %731 = arith.select %729, %557, %730 : vector<1x128xi1>, vector<1x128xf32>
      %cst_209 = arith.constant dense<0.000000e+00> : vector<1xf32>
      %732 = vector.multi_reduction <add>, %731, %cst_209 [1] : vector<1x128xf32> to vector<1xf32>
      %733 = vector.shape_cast %732 : vector<1xf32> to vector<1x1xf32>
      %734 = vector.broadcast %arg2 : i32 to vector<1x128xi32>
      %735 = arith.cmpi eq, %4, %734 : vector<1x128xi32>
      %cst_210 = arith.constant 0.000000e+00 : f32
      %736 = vector.broadcast %cst_210 : f32 to vector<1x128xf32>
      %737 = arith.select %735, %564, %736 : vector<1x128xi1>, vector<1x128xf32>
      %cst_211 = arith.constant dense<0.000000e+00> : vector<1xf32>
      %738 = vector.multi_reduction <add>, %737, %cst_211 [1] : vector<1x128xf32> to vector<1xf32>
      %739 = vector.shape_cast %738 : vector<1xf32> to vector<1x1xf32>
      %740 = vector.broadcast %arg2 : i32 to vector<1x128xi32>
      %741 = arith.cmpi eq, %4, %740 : vector<1x128xi32>
      %cst_212 = arith.constant 0.000000e+00 : f32
      %742 = vector.broadcast %cst_212 : f32 to vector<1x128xf32>
      %743 = arith.select %741, %571, %742 : vector<1x128xi1>, vector<1x128xf32>
      %cst_213 = arith.constant dense<0.000000e+00> : vector<1xf32>
      %744 = vector.multi_reduction <add>, %743, %cst_213 [1] : vector<1x128xf32> to vector<1xf32>
      %745 = vector.shape_cast %744 : vector<1xf32> to vector<1x1xf32>
      %746 = vector.broadcast %arg2 : i32 to vector<1x128xi32>
      %747 = arith.cmpi eq, %4, %746 : vector<1x128xi32>
      %cst_214 = arith.constant 0.000000e+00 : f32
      %748 = vector.broadcast %cst_214 : f32 to vector<1x128xf32>
      %749 = arith.select %747, %580, %748 : vector<1x128xi1>, vector<1x128xf32>
      %cst_215 = arith.constant dense<0.000000e+00> : vector<1xf32>
      %750 = vector.multi_reduction <add>, %749, %cst_215 [1] : vector<1x128xf32> to vector<1xf32>
      %751 = vector.shape_cast %750 : vector<1xf32> to vector<1x1xf32>
      %752 = vector.broadcast %arg2 : i32 to vector<1x128xi32>
      %753 = arith.cmpi eq, %4, %752 : vector<1x128xi32>
      %cst_216 = arith.constant 0.000000e+00 : f32
      %754 = vector.broadcast %cst_216 : f32 to vector<1x128xf32>
      %755 = arith.select %753, %589, %754 : vector<1x128xi1>, vector<1x128xf32>
      %cst_217 = arith.constant dense<0.000000e+00> : vector<1xf32>
      %756 = vector.multi_reduction <add>, %755, %cst_217 [1] : vector<1x128xf32> to vector<1xf32>
      %757 = vector.shape_cast %756 : vector<1xf32> to vector<1x1xf32>
      %758 = vector.broadcast %arg2 : i32 to vector<1x128xi32>
      %759 = arith.cmpi eq, %4, %758 : vector<1x128xi32>
      %cst_218 = arith.constant 0.000000e+00 : f32
      %760 = vector.broadcast %cst_218 : f32 to vector<1x128xf32>
      %761 = arith.select %759, %598, %760 : vector<1x128xi1>, vector<1x128xf32>
      %cst_219 = arith.constant dense<0.000000e+00> : vector<1xf32>
      %762 = vector.multi_reduction <add>, %761, %cst_219 [1] : vector<1x128xf32> to vector<1xf32>
      %763 = vector.shape_cast %762 : vector<1xf32> to vector<1x1xf32>
      %764 = arith.mulf %715, %arg3 : vector<1x1xf32>
      %765 = arith.mulf %721, %arg6 : vector<1x1xf32>
      %766 = arith.addf %764, %765 : vector<1x1xf32>
      %767 = arith.mulf %727, %arg9 : vector<1x1xf32>
      %768 = arith.addf %766, %767 : vector<1x1xf32>
      %769 = arith.mulf %715, %arg4 : vector<1x1xf32>
      %770 = arith.mulf %721, %arg7 : vector<1x1xf32>
      %771 = arith.addf %769, %770 : vector<1x1xf32>
      %772 = arith.mulf %727, %arg10 : vector<1x1xf32>
      %773 = arith.addf %771, %772 : vector<1x1xf32>
      %774 = arith.mulf %715, %arg5 : vector<1x1xf32>
      %775 = arith.mulf %721, %arg8 : vector<1x1xf32>
      %776 = arith.addf %774, %775 : vector<1x1xf32>
      %777 = arith.mulf %727, %arg11 : vector<1x1xf32>
      %778 = arith.addf %776, %777 : vector<1x1xf32>
      %779 = arith.mulf %733, %arg3 : vector<1x1xf32>
      %780 = arith.mulf %739, %arg6 : vector<1x1xf32>
      %781 = arith.addf %779, %780 : vector<1x1xf32>
      %782 = arith.mulf %745, %arg9 : vector<1x1xf32>
      %783 = arith.addf %781, %782 : vector<1x1xf32>
      %784 = arith.mulf %733, %arg4 : vector<1x1xf32>
      %785 = arith.mulf %739, %arg7 : vector<1x1xf32>
      %786 = arith.addf %784, %785 : vector<1x1xf32>
      %787 = arith.mulf %745, %arg10 : vector<1x1xf32>
      %788 = arith.addf %786, %787 : vector<1x1xf32>
      %789 = arith.mulf %733, %arg5 : vector<1x1xf32>
      %790 = arith.mulf %739, %arg8 : vector<1x1xf32>
      %791 = arith.addf %789, %790 : vector<1x1xf32>
      %792 = arith.mulf %745, %arg11 : vector<1x1xf32>
      %793 = arith.addf %791, %792 : vector<1x1xf32>
      %794 = arith.mulf %751, %arg3 : vector<1x1xf32>
      %795 = arith.mulf %757, %arg6 : vector<1x1xf32>
      %796 = arith.addf %794, %795 : vector<1x1xf32>
      %797 = arith.mulf %763, %arg9 : vector<1x1xf32>
      %798 = arith.addf %796, %797 : vector<1x1xf32>
      %799 = arith.mulf %751, %arg4 : vector<1x1xf32>
      %800 = arith.mulf %757, %arg7 : vector<1x1xf32>
      %801 = arith.addf %799, %800 : vector<1x1xf32>
      %802 = arith.mulf %763, %arg10 : vector<1x1xf32>
      %803 = arith.addf %801, %802 : vector<1x1xf32>
      %804 = arith.mulf %751, %arg5 : vector<1x1xf32>
      %805 = arith.mulf %757, %arg8 : vector<1x1xf32>
      %806 = arith.addf %804, %805 : vector<1x1xf32>
      %807 = arith.mulf %763, %arg11 : vector<1x1xf32>
      %808 = arith.addf %806, %807 : vector<1x1xf32>
      %809 = arith.mulf %768, %768 : vector<1x1xf32>
      %810 = arith.mulf %783, %783 : vector<1x1xf32>
      %811 = arith.addf %809, %810 : vector<1x1xf32>
      %812 = arith.mulf %798, %798 : vector<1x1xf32>
      %813 = arith.addf %811, %812 : vector<1x1xf32>
      %814 = math.sqrt %813 : vector<1x1xf32>
      %cst_220 = arith.constant 1.000000e-30 : f32
      %815 = vector.broadcast %cst_220 : f32 to vector<1x1xf32>
      %816 = arith.addf %813, %815 : vector<1x1xf32>
      %817 = math.rsqrt %816 : vector<1x1xf32>
      %818 = arith.mulf %768, %817 : vector<1x1xf32>
      %819 = arith.mulf %783, %817 : vector<1x1xf32>
      %820 = arith.mulf %798, %817 : vector<1x1xf32>
      %821 = arith.mulf %818, %773 : vector<1x1xf32>
      %822 = arith.mulf %819, %788 : vector<1x1xf32>
      %823 = arith.addf %821, %822 : vector<1x1xf32>
      %824 = arith.mulf %820, %803 : vector<1x1xf32>
      %825 = arith.addf %823, %824 : vector<1x1xf32>
      %826 = arith.mulf %825, %818 : vector<1x1xf32>
      %827 = arith.subf %773, %826 : vector<1x1xf32>
      %828 = arith.mulf %825, %819 : vector<1x1xf32>
      %829 = arith.subf %788, %828 : vector<1x1xf32>
      %830 = arith.mulf %825, %820 : vector<1x1xf32>
      %831 = arith.subf %803, %830 : vector<1x1xf32>
      %832 = arith.mulf %827, %827 : vector<1x1xf32>
      %833 = arith.mulf %829, %829 : vector<1x1xf32>
      %834 = arith.addf %832, %833 : vector<1x1xf32>
      %835 = arith.mulf %831, %831 : vector<1x1xf32>
      %836 = arith.addf %834, %835 : vector<1x1xf32>
      %837 = math.sqrt %836 : vector<1x1xf32>
      %cst_221 = arith.constant 1.000000e-30 : f32
      %838 = vector.broadcast %cst_221 : f32 to vector<1x1xf32>
      %839 = arith.addf %836, %838 : vector<1x1xf32>
      %840 = math.rsqrt %839 : vector<1x1xf32>
      %841 = arith.mulf %827, %840 : vector<1x1xf32>
      %842 = arith.mulf %829, %840 : vector<1x1xf32>
      %843 = arith.mulf %831, %840 : vector<1x1xf32>
      %844 = arith.mulf %818, %778 : vector<1x1xf32>
      %845 = arith.mulf %819, %793 : vector<1x1xf32>
      %846 = arith.addf %844, %845 : vector<1x1xf32>
      %847 = arith.mulf %820, %808 : vector<1x1xf32>
      %848 = arith.addf %846, %847 : vector<1x1xf32>
      %849 = arith.mulf %848, %818 : vector<1x1xf32>
      %850 = arith.subf %778, %849 : vector<1x1xf32>
      %851 = arith.mulf %848, %819 : vector<1x1xf32>
      %852 = arith.subf %793, %851 : vector<1x1xf32>
      %853 = arith.mulf %848, %820 : vector<1x1xf32>
      %854 = arith.subf %808, %853 : vector<1x1xf32>
      %855 = arith.mulf %841, %850 : vector<1x1xf32>
      %856 = arith.mulf %842, %852 : vector<1x1xf32>
      %857 = arith.addf %855, %856 : vector<1x1xf32>
      %858 = arith.mulf %843, %854 : vector<1x1xf32>
      %859 = arith.addf %857, %858 : vector<1x1xf32>
      %860 = arith.mulf %859, %841 : vector<1x1xf32>
      %861 = arith.subf %850, %860 : vector<1x1xf32>
      %862 = arith.mulf %859, %842 : vector<1x1xf32>
      %863 = arith.subf %852, %862 : vector<1x1xf32>
      %864 = arith.mulf %859, %843 : vector<1x1xf32>
      %865 = arith.subf %854, %864 : vector<1x1xf32>
      %866 = arith.mulf %861, %861 : vector<1x1xf32>
      %867 = arith.mulf %863, %863 : vector<1x1xf32>
      %868 = arith.addf %866, %867 : vector<1x1xf32>
      %869 = arith.mulf %865, %865 : vector<1x1xf32>
      %870 = arith.addf %868, %869 : vector<1x1xf32>
      %871 = math.sqrt %870 : vector<1x1xf32>
      %cst_222 = arith.constant 1.000000e-30 : f32
      %872 = vector.broadcast %cst_222 : f32 to vector<1x1xf32>
      %873 = arith.addf %870, %872 : vector<1x1xf32>
      %874 = math.rsqrt %873 : vector<1x1xf32>
      %875 = arith.mulf %861, %874 : vector<1x1xf32>
      %876 = arith.mulf %863, %874 : vector<1x1xf32>
      %877 = arith.mulf %865, %874 : vector<1x1xf32>
      %cst_223 = arith.constant 1.000000e-30 : f32
      %878 = vector.broadcast %cst_223 : f32 to vector<1x1xf32>
      %879 = arith.addf %814, %878 : vector<1x1xf32>
      %880 = math.log %879 : vector<1x1xf32>
      %881 = arith.addf %arg12, %880 : vector<1x1xf32>
      %cst_224 = arith.constant 1.000000e-30 : f32
      %882 = vector.broadcast %cst_224 : f32 to vector<1x1xf32>
      %883 = arith.addf %837, %882 : vector<1x1xf32>
      %884 = math.log %883 : vector<1x1xf32>
      %885 = arith.addf %arg13, %884 : vector<1x1xf32>
      %cst_225 = arith.constant 1.000000e-30 : f32
      %886 = vector.broadcast %cst_225 : f32 to vector<1x1xf32>
      %887 = arith.addf %871, %886 : vector<1x1xf32>
      %888 = math.log %887 : vector<1x1xf32>
      %889 = arith.addf %arg14, %888 : vector<1x1xf32>
      %c0_i32_226 = arith.constant 0 : i32
      %890 = vector.broadcast %c0_i32_226 : i32 to vector<1x1xi32>
      %c1_i32_227 = arith.constant 1 : i32
      %891 = arith.addi %arg2, %c1_i32_227 : i32
      %892 = vector.broadcast %891 : i32 to vector<1x1xi32>
      %893 = arith.addi %890, %892 : vector<1x1xi32>
      %894 = arith.sitofp %893 : vector<1x1xi32> to vector<1x1xf32>
      %cst_228 = arith.constant 0.00999999977 : f32
      %895 = vector.broadcast %cst_228 : f32 to vector<1x1xf32>
      %896 = arith.mulf %894, %895 : vector<1x1xf32>
      %cst_229 = arith.constant 1.000000e+00 : f32
      %897 = vector.broadcast %cst_229 : f32 to vector<1x1xf32>
      %898 = arith.divf %897, %896 : vector<1x1xf32>
      %899 = arith.mulf %881, %898 : vector<1x1xf32>
      %900 = arith.addf %arg15, %899 : vector<1x1xf32>
      %901 = arith.mulf %885, %898 : vector<1x1xf32>
      %902 = arith.addf %arg16, %901 : vector<1x1xf32>
      %903 = arith.mulf %889, %898 : vector<1x1xf32>
      %904 = arith.addf %arg17, %903 : vector<1x1xf32>
      scf.yield %818, %841, %875, %819, %842, %876, %820, %843, %877, %881, %885, %889, %900, %902, %904 : vector<1x1xf32>, vector<1x1xf32>, vector<1x1xf32>, vector<1x1xf32>, vector<1x1xf32>, vector<1x1xf32>, vector<1x1xf32>, vector<1x1xf32>, vector<1x1xf32>, vector<1x1xf32>, vector<1x1xf32>, vector<1x1xf32>, vector<1x1xf32>, vector<1x1xf32>, vector<1x1xf32>
    }
    %c128_i32_196 = arith.constant 128 : i32
    %cst_197 = arith.constant 7.812500e-03 : f32
    %702 = vector.broadcast %cst_197 : f32 to vector<1x1xf32>
    %703 = arith.mulf %701#12, %702 : vector<1x1xf32>
    %cst_198 = arith.constant 7.812500e-03 : f32
    %704 = vector.broadcast %cst_198 : f32 to vector<1x1xf32>
    %705 = arith.mulf %701#13, %704 : vector<1x1xf32>
    %cst_199 = arith.constant 7.812500e-03 : f32
    %706 = vector.broadcast %cst_199 : f32 to vector<1x1xf32>
    %707 = arith.mulf %701#14, %706 : vector<1x1xf32>
    %708 = tpu.concatenate %703, %705, %707 in 0 : vector<1x1xf32>, vector<1x1xf32>, vector<1x1xf32> -> vector<3x1xf32>
    %c0_200 = arith.constant 0 : index
    %c0_201 = arith.constant 0 : index
    %709 = vector.load %arg1[%c0_200, %c0_201] : memref<3x1xf32, #tpu.memory_space<vmem>>, vector<3x1xf32>
    tpu.vector_store %arg1[%c0_200, %c0_201], %708 {strides = array<i32>} : memref<3x1xf32, #tpu.memory_space<vmem>>, vector<3x1xf32>,
    return
  }
}

</mosaic_0001>

<bundles_post_ra>
// kernel: fls_forward.1
= control target key start
LH: loop header
LB: loop body
LE: loop exit
PB: predicated region body
PF: predicated region fallthrough
CT: control target
= control target key end

     0   :  { %6 = vsyncpa [#allocation3], 0  ;;  %s1209_s6 = smov [#allocation2]   ;;  %s1819_s0 = inlined_call_operand.hbm [shape: f32[3], index: 0, kind: input, shape index: {}]   ;;  %s1820_s1 = inlined_call_operand.vmem [shape: f32[3,1], index: 1, kind: output, shape index: {}]  }
   0x1   :  { %14 = dma.hbm_to_smem %s1819_s0, 16, %s1209_s6, [#allocation3]  }
   0x2   :  { %1115 = dma.done.wait [#allocation3], 16  }
   0x3   :  { %1116 = vsyncadd [#allocation3], 4294967280 }
   0x4   :  { %18 = sfence }
   0x5   :  { %v19_v0 = vlaneseq  ;;  %s21_s9 = sld [smem:[#allocation2]]  ;;  %v1225_v5 = vmov 0.0   ;;  %v1227_v6 = vmov 0.0   ;;  %v1229_v7 = vmov 0.0   ;;  %s1237_s0 = smov 0  }
   0x6   :  { %s803_s10 = sld [smem:[#allocation2 + $0x1]] }
   0x7   :  { %v1223_v1 = vand.u32 127, %v19_v0  ;;  %s804_s11 = sld [smem:[#allocation2 + $0x2]] }
   0xb   :  { %v22_v2 = vstv %s21_s9  }
   0xc   :  { %v25_v3 = vstv %s803_s10  }
   0xd   :  { %v28_v4 = vstv %s804_s11  }
   0xe LB: > { %s805_s12 = sadd.s32 4294967286, %s1143_s0  ;;  %v48_v9 = vsub.f32 %v1135_v3, %v1139_v2  ;;  %v50_v10 = vsub.f32 28.0, %v1131_v4  ;;  %v53_v11 = vmul.f32 %v1135_v3, %v1139_v2  ;;  %v54_v12 = vmul.f32 2.6666667, %v1131_v4  ;;  %s35_s0 = sadd.s32 1, %s1143_s0   ;;  %s1143_s0 = sphi %s1237_s0, %s35_s0   ;;  %v1139_v2 = vphi %v22_v2, %v104_v2   ;;  %v1135_v3 = vphi %v25_v3, %v111_v3   ;;  %v1131_v4 = vphi %v28_v4, %v118_v4   ;;  %v1127_v7 = vphi %v1229_v7, %v1826_v7   ;;  %v1123_v6 = vphi %v1227_v6, %v1825_v6   ;;  %v1119_v5 = vphi %v1225_v5, %v1824_v5  }
   0xf   : > { %v43_v8 = vstv %s805_s12  ;;  %p32_p0 = scmp.ge.s32.totalorder %s35_s0, 138  }
  0x10   : > { %vm44_vm0 = vcmp.eq.s32.totalorder %v1223_v1, %v43_v8  ;;  %v49_v16 = vmul.f32 10.0, %v48_v9  ;;  %v51_v17 = vmul.f32 %v1139_v2, %v50_v10  ;;  %v55_v18 = vsub.f32 %v53_v11, %v54_v12  ;;  %s1596_s13 = smov (%p32_p0), 0  }
  0x11   : > { %v1263_v7 = vsel %vm44_vm0, %v1139_v2, %v1127_v7   ;;  %v1266_v6 = vsel %vm44_vm0, %v1135_v3, %v1123_v6   ;;  %v1269_v5 = vsel %vm44_vm0, %v1131_v4, %v1119_v5  }
  0x12   : > { %v1821_v13 = vmov %v1263_v7  ;;  %v1822_v14 = vmov %v1266_v6  ;;  %v1823_v15 = vmov %v1269_v5  ;;  %v56_v19 = vmul.f32 0.005, %v49_v16 }
  0x13   : > { %v52_v20 = vsub.f32 %v51_v17, %v1135_v3  ;;  %v60_v21 = vmul.f32 0.005, %v55_v18 }
  0x14   : > { %v57_v22 = vadd.f32 %v1139_v2, %v56_v19 }
  0x15   : > { %v58_v23 = vmul.f32 0.005, %v52_v20  ;;  %v61_v24 = vadd.f32 %v1131_v4, %v60_v21 }
  0x17   : > { %v59_v25 = vadd.f32 %v1135_v3, %v58_v23  ;;  %v64_v26 = vsub.f32 28.0, %v61_v24  ;;  %v68_v27 = vmul.f32 2.6666667, %v61_v24  ;;  %v1304_v23 = vsub.f32 (%p32_p0), 28.0, %v1823_v15 }
  0x18   :  { %v145_v24 = vsub.f32 (%p32_p0), %v1822_v14, %v1821_v13 }
  0x19   : > { %v62_v28 = vsub.f32 %v59_v25, %v57_v22  ;;  %v65_v29 = vmul.f32 %v64_v26, %v57_v22  ;;  %v67_v30 = vmul.f32 %v59_v25, %v57_v22  ;;  %v150_v26 = vmul.f32 (%p32_p0), 2.6666667, %v1823_v15 }
  0x1b   : > { %v63_v31 = vmul.f32 10.0, %v62_v28  ;;  %v66_v32 = vsub.f32 %v65_v29, %v59_v25  ;;  %v69_v33 = vsub.f32 %v67_v30, %v68_v27  ;;  %v149_v25 = vmul.f32 (%p32_p0), %v1822_v14, %v1821_v13 }
  0x1c   :  { %v146_v27 = vmul.f32 (%p32_p0), 10.0, %v145_v24  ;;  %v147_v28 = vmul.f32 (%p32_p0), %v1304_v23, %v1821_v13 }
  0x1d   : > { %v70_v34 = vmul.f32 0.005, %v63_v31  ;;  %v72_v35 = vmul.f32 0.005, %v66_v32  ;;  %v74_v36 = vmul.f32 0.005, %v69_v33  ;;  %v151_v29 = vsub.f32 (%p32_p0), %v149_v25, %v150_v26 }
  0x1e   : > { %v98_v44 = vmul.f32 2.0, %v63_v31  ;;  %v112_v45 = vmul.f32 2.0, %v69_v33  ;;  %v105_v49 = vmul.f32 2.0, %v66_v32  ;;  %v152_v30 = vmul.f32 (%p32_p0), 0.00125, %v146_v27 }
  0x1f   : > { %v71_v37 = vadd.f32 %v1139_v2, %v70_v34  ;;  %v73_v38 = vadd.f32 %v1135_v3, %v72_v35  ;;  %v75_v39 = vadd.f32 %v1131_v4, %v74_v36  ;;  %v156_v31 = vmul.f32 (%p32_p0), 0.00125, %v151_v29 }
  0x20   : > { %v99_v53 = vadd.f32 %v98_v44, %v49_v16  ;;  %v113_v55 = vadd.f32 %v112_v45, %v55_v18  ;;  %v106_v60 = vadd.f32 %v105_v49, %v52_v20 }
  0x21   : > { %v76_v40 = vsub.f32 %v73_v38, %v71_v37  ;;  %v78_v41 = vsub.f32 28.0, %v75_v39  ;;  %v81_v42 = vmul.f32 %v73_v38, %v71_v37  ;;  %v82_v43 = vmul.f32 2.6666667, %v75_v39 }
  0x22   :  { %v157_v32 = vadd.f32 (%p32_p0), %v156_v31, %v1823_v15 }
  0x23   : > { %v77_v46 = vmul.f32 10.0, %v76_v40  ;;  %v79_v47 = vmul.f32 %v78_v41, %v71_v37  ;;  %v83_v48 = vsub.f32 %v81_v42, %v82_v43 }
  0x24   :  { %v160_v34 = vsub.f32 (%p32_p0), 28.0, %v157_v32  ;;  %v164_v35 = vmul.f32 (%p32_p0), 2.6666667, %v157_v32  ;;  %v133_v32 = vmul.f32 (%p32_p0), 0.0, %v1821_v13 }
  0x25   : > { %v80_v50 = vsub.f32 %v79_v47, %v73_v38  ;;  %v84_v51 = vmul.f32 0.01, %v77_v46  ;;  %v88_v52 = vmul.f32 0.01, %v83_v48  ;;  %v100_v54 = vmul.f32 2.0, %v77_v46 }
  0x26   : > { %v114_v56 = vmul.f32 2.0, %v83_v48 }
  0x27   : > { %v85_v57 = vadd.f32 %v1139_v2, %v84_v51  ;;  %v86_v58 = vmul.f32 0.01, %v80_v50  ;;  %v89_v59 = vadd.f32 %v1131_v4, %v88_v52  ;;  %v107_v61 = vmul.f32 2.0, %v80_v50 }
  0x28   : > { %v101_v5 = vadd.f32 %v100_v54, %v99_v53  ;;  %v115_v6 = vadd.f32 %v114_v56, %v113_v55 }
  0x29   : > { %v87_v62 = vadd.f32 %v1135_v3, %v86_v58  ;;  %v92_v63 = vsub.f32 28.0, %v89_v59  ;;  %v96_v0 = vmul.f32 2.6666667, %v89_v59  ;;  %v108_v10 = vadd.f32 %v107_v61, %v106_v60 }
  0x2b   : > { %v90_v7 = vsub.f32 %v87_v62, %v85_v57  ;;  %v93_v8 = vmul.f32 %v92_v63, %v85_v57  ;;  %v95_v9 = vmul.f32 %v87_v62, %v85_v57 }
  0x2d   : > { %v91_v11 = vmul.f32 10.0, %v90_v7  ;;  %v94_v12 = vsub.f32 %v93_v8, %v87_v62  ;;  %v97_v16 = vsub.f32 %v95_v9, %v96_v0  ;;  %v1826_v7 = vmov %v1821_v13 }
  0x2f   : > { %v102_v17 = vadd.f32 %v101_v5, %v91_v11  ;;  %v109_v18 = vadd.f32 %v108_v10, %v94_v12  ;;  %v116_v19 = vadd.f32 %v115_v6, %v97_v16  ;;  %v1824_v5 = vmov %v1823_v15  ;;  %34 = sbr.rel (!%p32_p0) target bundleno = 14 (0xe), region = 42 }
  0x30   : > { %v1825_v6 = vmov %v1822_v14 }
  0x31   : > { %v103_v21 = vmul.f32 0.0016666667, %v102_v17  ;;  %v110_v22 = vmul.f32 0.0016666667, %v109_v18  ;;  %v117_v20 = vmul.f32 0.0016666667, %v116_v19 }
  0x33   : > { %v104_v2 = vadd.f32 %v1139_v2, %v103_v21   ;;  %v111_v3 = vadd.f32 %v1135_v3, %v110_v22   ;;  %v118_v4 = vadd.f32 %v1131_v4, %v117_v20  }
  0x34   :  { %v148_v2 = vsub.f32 %v147_v28, %v1822_v14  ;;  %v153_v3 = vadd.f32 %v152_v30, %v1821_v13 }
  0x36   :  { %v154_v4 = vmul.f32 0.00125, %v148_v2  ;;  %v161_v38 = vmul.f32 %v160_v34, %v153_v3 }
  0x38   :  { %v155_v33 = vadd.f32 %v154_v4, %v1822_v14 }
  0x3a   :  { %v158_v36 = vsub.f32 %v155_v33, %v153_v3  ;;  %v163_v37 = vmul.f32 %v155_v33, %v153_v3  ;;  %v162_v41 = vsub.f32 %v161_v38, %v155_v33  ;;  %v137_v33 = vmul.f32 0.0, %v1822_v14 }
  0x3c   :  { %v159_v39 = vmul.f32 10.0, %v158_v36  ;;  %v165_v40 = vsub.f32 %v163_v37, %v164_v35  ;;  %v168_v44 = vmul.f32 0.00125, %v162_v41  ;;  %v201_v57 = vmul.f32 2.0, %v162_v41 }
  0x3e   :  { %v166_v42 = vmul.f32 0.00125, %v159_v39  ;;  %v170_v43 = vmul.f32 0.00125, %v165_v40  ;;  %v169_v47 = vadd.f32 %v168_v44, %v1822_v14  ;;  %v194_v52 = vmul.f32 2.0, %v159_v39 }
  0x3f   :  { %v208_v54 = vmul.f32 2.0, %v165_v40  ;;  %v202_v8 = vadd.f32 %v201_v57, %v148_v2  ;;  %v125_v2 = vmul.f32 0.0, %v1304_v23  ;;  %v141_v40 = vadd.f32 %v137_v33, %v133_v32 }
  0x40   :  { %v167_v45 = vadd.f32 %v166_v42, %v1821_v13  ;;  %v171_v46 = vadd.f32 %v170_v43, %v1823_v15  ;;  %v195_v61 = vadd.f32 %v194_v52, %v146_v27 }
  0x41   :  { %v209_v0 = vadd.f32 %v208_v54, %v151_v29  ;;  %v120_v29 = vsub.f32 0.0, %v1821_v13  ;;  %v806_v35 = vadd.f32 -1.0, %v125_v2 }
  0x42   :  { %v174_v48 = vsub.f32 28.0, %v171_v46  ;;  %v178_v49 = vmul.f32 2.6666667, %v171_v46  ;;  %v172_v50 = vsub.f32 %v169_v47, %v167_v45  ;;  %v177_v51 = vmul.f32 %v169_v47, %v167_v45 }
  0x43   :  { %v121_v34 = vmul.f32 0.0, %v120_v29  ;;  %v807_v46 = vadd.f32 -2.6666667, %v141_v40 }
  0x44   :  { %v175_v53 = vmul.f32 %v174_v48, %v167_v45  ;;  %v173_v55 = vmul.f32 10.0, %v172_v50  ;;  %v179_v56 = vsub.f32 %v177_v51, %v178_v49  ;;  %v134_v49 = vadd.f32 %v133_v32, %v1822_v14 }
  0x45   :  { %v127_v39 = vadd.f32 %v806_v35, %v121_v34  ;;  %v122_v44 = vadd.f32 %v121_v34, %v1304_v23  ;;  %v138_v51 = vadd.f32 %v137_v33, %v1821_v13 }
  0x46   :  { %v176_v58 = vsub.f32 %v175_v53, %v169_v47  ;;  %v180_v59 = vmul.f32 0.0025, %v173_v55  ;;  %v184_v60 = vmul.f32 0.0025, %v179_v56  ;;  %v196_v63 = vmul.f32 2.0, %v173_v55 }
  0x47   :  { %v210_v5 = vmul.f32 2.0, %v179_v56  ;;  %v128_v45 = vmul.f32 0.0025, %v127_v39  ;;  %v1355_v54 = vmul.f32 0.0025, %v122_v44 }
  0x48   :  { %v182_v62 = vmul.f32 0.0025, %v176_v58  ;;  %v181_v6 = vadd.f32 %v180_v59, %v1821_v13  ;;  %v185_v7 = vadd.f32 %v184_v60, %v1823_v15  ;;  %v203_v9 = vmul.f32 2.0, %v176_v58 }
  0x49   :  { %v197_v18 = vadd.f32 %v196_v63, %v195_v61  ;;  %v211_v19 = vadd.f32 %v210_v5, %v209_v0  ;;  %v1357_v23 = vadd.f32 1.0, %v128_v45  ;;  %v143_v55 = vmul.f32 0.0025, %v807_v46 }
  0x4a   :  { %v183_v10 = vadd.f32 %v182_v62, %v1822_v14  ;;  %v188_v11 = vsub.f32 28.0, %v185_v7  ;;  %v192_v12 = vmul.f32 2.6666667, %v185_v7  ;;  %v204_v22 = vadd.f32 %v203_v9, %v202_v8 }
  0x4b   :  { %v1362_v59 = vmul.f32 0.0025, %v134_v49  ;;  %v1364_v60 = vmul.f32 0.0025, %v138_v51  ;;  %v1367_v63 = vadd.f32 1.0, %v143_v55 }
  0x4c   :  { %v186_v16 = vsub.f32 %v183_v10, %v181_v6  ;;  %v191_v17 = vmul.f32 %v183_v10, %v181_v6  ;;  %v189_v21 = vmul.f32 %v188_v11, %v181_v6  ;;  %v808_v0 = vadd.f32 -0.975, %v1355_v54 }
  0x4d   :  { %v809_v5 = vadd.f32 -0.024999999, %v1357_v23  ;;  %v1377_v11 = vmul.f32 2.6666667, %v1364_v60 }
  0x4e   :  { %v187_v20 = vmul.f32 10.0, %v186_v16  ;;  %v193_v24 = vsub.f32 %v191_v17, %v192_v12  ;;  %v190_v25 = vsub.f32 %v189_v21, %v183_v10  ;;  %v1374_v10 = vmul.f32 2.6666667, %v1362_v59 }
  0x4f   :  { %v222_v21 = vmul.f32 10.0, %v809_v5 }
  0x50   :  { %v198_v26 = vadd.f32 %v197_v18, %v187_v20  ;;  %v212_v27 = vadd.f32 %v211_v19, %v193_v24  ;;  %v205_v28 = vadd.f32 %v204_v22, %v190_v25  ;;  %v218_v19 = vmul.f32 10.0, %v808_v0 }
  0x51   :  { %v1381_v22 = vmul.f32 2.6666667, %v1367_v63 }
  0x52   :  { %v199_v30 = vmul.f32 0.00041666668, %v198_v26  ;;  %v213_v31 = vmul.f32 0.00041666668, %v212_v27  ;;  %v206_v3 = vmul.f32 0.00041666668, %v205_v28 }
  0x54   :  { %v1326_v4 = vadd.f32 %v213_v31, %v1823_v15  ;;  %v1331_v36 = vadd.f32 %v199_v30, %v1821_v13  ;;  %v1334_v37 = vadd.f32 %v206_v3, %v1822_v14  ;;  %v130_v14 = vadd.f32 %v125_v2, %v120_v29 }
  0x56   :  { %v215_v38 = vsub.f32 28.0, %v1326_v4  ;;  %v267_v15 = vsub.f32 %v1334_v37, %v1331_v36  ;;  %v271_v47 = vmul.f32 %v1334_v37, %v1331_v36  ;;  %v272_v48 = vmul.f32 2.6666667, %v1326_v4 }
  0x57   :  { %v1371_v9 = vmul.f32 0.0025, %v130_v14  ;;  %v216_v18 = vsub.f32 0.0, %v1331_v36  ;;  %v246_v20 = vmul.f32 0.975, %v1334_v37  ;;  %v247_v24 = vmul.f32 %v1331_v36, %v1355_v54 }
  0x58   :  { %v269_v41 = vmul.f32 %v215_v38, %v1331_v36  ;;  %v1340_v42 = vmul.f32 10.0, %v267_v15  ;;  %v1352_v52 = vsub.f32 %v271_v47, %v272_v48  ;;  %v228_v27 = vmul.f32 0.975, %v215_v38 }
  0x59   :  { %v234_v28 = vmul.f32 0.024999999, %v215_v38  ;;  %v253_v29 = vmul.f32 0.024999999, %v1334_v37  ;;  %v254_v2 = vmul.f32 %v1331_v36, %v1357_v23  ;;  %v260_v30 = vmul.f32 0.0, %v1334_v37 }
  0x5a   :  { %v1343_v43 = vsub.f32 %v269_v41, %v1334_v37  ;;  %v274_v50 = vmul.f32 0.00125, %v1340_v42  ;;  %v278_v58 = vmul.f32 0.00125, %v1352_v52  ;;  %v230_v33 = vmul.f32 %v216_v18, %v1362_v59 }
  0x5b   :  { %v236_v34 = vmul.f32 %v216_v18, %v1364_v60  ;;  %v240_v35 = vmul.f32 0.0, %v215_v38  ;;  %v261_v39 = vmul.f32 %v1331_v36, %v1371_v9  ;;  %v248_v40 = vadd.f32 %v247_v24, %v246_v20 }
  0x5c   :  { %v276_v53 = vmul.f32 0.00125, %v1343_v43  ;;  %v275_v56 = vadd.f32 %v274_v50, %v1331_v36  ;;  %v279_v13 = vadd.f32 %v278_v58, %v1326_v4  ;;  %v229_v45 = vsub.f32 %v228_v27, %v1355_v54 }
  0x5d   :  { %v235_v46 = vsub.f32 %v234_v28, %v1357_v23  ;;  %v255_v49 = vadd.f32 %v254_v2, %v253_v29  ;;  %v241_v38 = vsub.f32 %v240_v35, %v1371_v9  ;;  %v242_v55 = vmul.f32 %v216_v18, %v1367_v63 }
  0x5e   :  { %v277_v57 = vadd.f32 %v276_v53, %v1334_v37  ;;  %v282_v7 = vsub.f32 28.0, %v279_v13  ;;  %v286_v8 = vmul.f32 2.6666667, %v279_v13  ;;  %v250_v58 = vsub.f32 %v248_v40, %v1374_v10 }
  0x5f   :  { %v237_v0 = vadd.f32 %v236_v34, %v235_v46 }
  0x60   :  { %v280_v61 = vsub.f32 %v277_v57, %v275_v56  ;;  %v285_v62 = vmul.f32 %v277_v57, %v275_v56  ;;  %v283_v12 = vmul.f32 %v282_v7, %v275_v56  ;;  %v262_v56 = vadd.f32 %v261_v39, %v260_v30 }
  0x61   :  { %v257_v7 = vsub.f32 %v255_v49, %v1377_v11  ;;  %v238_v28 = vmul.f32 0.0025, %v237_v0 }
  0x62   :  { %v281_v6 = vmul.f32 10.0, %v280_v61  ;;  %v287_v16 = vsub.f32 %v285_v62, %v286_v8  ;;  %v284_v25 = vsub.f32 %v283_v12, %v277_v57  ;;  %v231_v62 = vadd.f32 %v230_v33, %v229_v45 }
  0x63   :  { %v251_v45 = vmul.f32 0.0025, %v250_v58  ;;  %v258_v46 = vmul.f32 0.0025, %v257_v7 }
  0x64   :  { %v288_v17 = vmul.f32 0.00125, %v281_v6  ;;  %v292_v26 = vmul.f32 0.00125, %v287_v16  ;;  %v290_v3 = vmul.f32 0.00125, %v284_v25 }
  0x65   :  { %v316_v47 = vmul.f32 2.0, %v281_v6  ;;  %v330_v48 = vmul.f32 2.0, %v287_v16  ;;  %v323_v57 = vmul.f32 2.0, %v284_v25 }
  0x66   :  { %v289_v31 = vadd.f32 %v288_v17, %v1331_v36  ;;  %v293_v32 = vadd.f32 %v292_v26, %v1326_v4  ;;  %v291_v15 = vadd.f32 %v290_v3, %v1334_v37  ;;  %v243_v17 = vadd.f32 %v242_v55, %v241_v38 }
  0x67   :  { %v317_v5 = vadd.f32 %v316_v47, %v1340_v42  ;;  %v331_v6 = vadd.f32 %v330_v48, %v1352_v52  ;;  %v324_v20 = vadd.f32 %v323_v57, %v1343_v43  ;;  %v232_v42 = vmul.f32 0.0025, %v231_v62 }
  0x68   :  { %v296_v41 = vsub.f32 28.0, %v293_v32  ;;  %v300_v44 = vmul.f32 2.6666667, %v293_v32  ;;  %v294_v50 = vsub.f32 %v291_v15, %v289_v31  ;;  %v299_v53 = vmul.f32 %v291_v15, %v289_v31 }
  0x69   :  { %v219_v3 = vmul.f32 0.0025, %v218_v19  ;;  %v223_v32 = vmul.f32 0.0025, %v222_v21  ;;  %v244_v33 = vmul.f32 0.0025, %v243_v17  ;;  %v264_v43 = vsub.f32 %v262_v56, %v1381_v22 }
  0x6a   :  { %v297_v51 = vmul.f32 %v296_v41, %v289_v31  ;;  %v295_v14 = vmul.f32 10.0, %v294_v50  ;;  %v301_v61 = vsub.f32 %v299_v53, %v300_v44  ;;  %v1412_v41 = vadd.f32 %v232_v42, %v1355_v54 }
  0x6b   :  { %v1415_v44 = vadd.f32 %v238_v28, %v1357_v23  ;;  %v1417_v48 = vadd.f32 0.975, %v219_v3  ;;  %v1419_v22 = vadd.f32 0.024999999, %v223_v32  ;;  %v1422_v49 = vadd.f32 %v244_v33, %v1371_v9 }
  0x6c   :  { %v298_v13 = vsub.f32 %v297_v51, %v291_v15  ;;  %v302_v8 = vmul.f32 0.0025, %v295_v14  ;;  %v306_v16 = vmul.f32 0.0025, %v301_v61  ;;  %v318_v18 = vmul.f32 2.0, %v295_v14 }
  0x6d   :  { %v332_v24 = vmul.f32 2.0, %v301_v61  ;;  %v225_v15 = vmul.f32 10.0, %v1371_v9  ;;  %v265_v50 = vmul.f32 0.0025, %v264_v43  ;;  %v1427_v23 = vadd.f32 %v251_v45, %v1362_v59 }
  0x6e   :  { %v304_v12 = vmul.f32 0.0025, %v298_v13  ;;  %v303_v10 = vadd.f32 %v302_v8, %v1331_v36  ;;  %v307_v26 = vadd.f32 %v306_v16, %v1326_v4  ;;  %v325_v27 = vmul.f32 2.0, %v298_v13 }
  0x6f   :  { %v319_v52 = vadd.f32 %v318_v18, %v317_v5  ;;  %v333_v29 = vadd.f32 %v332_v24, %v331_v6  ;;  %v1424_v38 = vmul.f32 0.0025, %v225_v15  ;;  %v339_v55 = vsub.f32 %v1412_v41, %v1417_v48 }
  0x70   :  { %v305_v25 = vadd.f32 %v304_v12, %v1334_v37  ;;  %v310_v2 = vsub.f32 28.0, %v307_v26  ;;  %v314_v31 = vmul.f32 2.6666667, %v307_v26  ;;  %v326_v40 = vadd.f32 %v325_v27, %v324_v20 }
  0x71   :  { %v343_v56 = vsub.f32 %v1415_v44, %v1419_v22  ;;  %v1434_v57 = vadd.f32 %v258_v46, %v1364_v60  ;;  %v1443_v13 = vadd.f32 %v265_v50, %v1367_v63  ;;  %v347_v59 = vsub.f32 %v1422_v49, %v1424_v38 }
  0x72   :  { %v308_v11 = vsub.f32 %v305_v25, %v303_v10  ;;  %v313_v30 = vmul.f32 %v305_v25, %v303_v10  ;;  %v311_v35 = vmul.f32 %v310_v2, %v303_v10  ;;  %v340_v0 = vmul.f32 10.0, %v339_v55 }
  0x73   :  { %v348_v7 = vmul.f32 10.0, %v347_v59 }
  0x74   :  { %v309_v34 = vmul.f32 10.0, %v308_v11  ;;  %v315_v39 = vsub.f32 %v313_v30, %v314_v31  ;;  %v312_v47 = vsub.f32 %v311_v35, %v305_v25  ;;  %v341_v18 = vmul.f32 0.0025, %v340_v0 }
  0x75   :  { %v349_v42 = vmul.f32 0.0025, %v348_v7 }
  0x76   :  { %v320_v19 = vadd.f32 %v319_v52, %v309_v34  ;;  %v334_v21 = vadd.f32 %v333_v29, %v315_v39  ;;  %v327_v53 = vadd.f32 %v326_v40, %v312_v47  ;;  %v1473_v3 = vadd.f32 %v341_v18, %v1417_v48 }
  0x77   :  { %v1482_v34 = vadd.f32 %v349_v42, %v1424_v38 }
  0x78   :  { %v321_v51 = vmul.f32 0.00041666668, %v320_v19  ;;  %v335_v54 = vmul.f32 0.00041666668, %v334_v21  ;;  %v328_v58 = vmul.f32 0.00041666668, %v327_v53 }
  0x7a   :  { %v1437_v9 = vadd.f32 %v321_v51, %v1331_v36  ;;  %v1440_v14 = vadd.f32 %v335_v54, %v1326_v4  ;;  %v1448_v61 = vadd.f32 %v328_v58, %v1334_v37  ;;  %v344_v36 = vmul.f32 10.0, %v343_v56 }
  0x7c   :  { %v337_v62 = vsub.f32 28.0, %v1440_v14  ;;  %v338_v60 = vsub.f32 0.0, %v1437_v9  ;;  %v390_v17 = vsub.f32 %v1448_v61, %v1437_v9  ;;  %v345_v10 = vmul.f32 0.0025, %v344_v36 }
  0x7d   :  { %v395_v27 = vmul.f32 2.6666667, %v1440_v14  ;;  %v394_v30 = vmul.f32 %v1448_v61, %v1437_v9 }
  0x7e   :  { %v351_v5 = vmul.f32 %v337_v62, %v1417_v48  ;;  %v353_v4 = vmul.f32 %v338_v60, %v1427_v23  ;;  %v357_v6 = vmul.f32 %v337_v62, %v1419_v22  ;;  %v359_v63 = vmul.f32 %v338_v60, %v1434_v57 }
  0x7f   :  { %v363_v8 = vmul.f32 %v337_v62, %v1424_v38  ;;  %v365_v37 = vmul.f32 %v338_v60, %v1443_v13  ;;  %v392_v24 = vmul.f32 %v337_v62, %v1437_v9  ;;  %v1465_v52 = vmul.f32 10.0, %v390_v17 }
  0x80   :  { %v352_v12 = vsub.f32 %v351_v5, %v1412_v41  ;;  %v358_v16 = vsub.f32 %v357_v6, %v1415_v44  ;;  %v1476_v32 = vadd.f32 %v345_v10, %v1419_v22  ;;  %v396_v43 = vsub.f32 %v394_v30, %v395_v27 }
  0x81   :  { %v364_v20 = vsub.f32 %v363_v8, %v1422_v49  ;;  %v1468_v2 = vsub.f32 %v392_v24, %v1448_v61  ;;  %v397_v40 = vmul.f32 0.00125, %v1465_v52  ;;  %v369_v24 = vmul.f32 %v1448_v61, %v1417_v48 }
  0x82   :  { %v354_v25 = vadd.f32 %v353_v4, %v352_v12  ;;  %v360_v26 = vadd.f32 %v359_v63, %v358_v16  ;;  %v401_v45 = vmul.f32 0.00125, %v396_v43  ;;  %v370_v10 = vmul.f32 %v1437_v9, %v1412_v41 }
  0x83   :  { %v366_v28 = vadd.f32 %v365_v37, %v364_v20  ;;  %v399_v15 = vmul.f32 0.00125, %v1468_v2  ;;  %v398_v47 = vadd.f32 %v397_v40, %v1437_v9  ;;  %v383_v48 = vmul.f32 %v1448_v61, %v1424_v38 }
  0x84   :  { %v355_v29 = vmul.f32 0.0025, %v354_v25  ;;  %v361_v11 = vmul.f32 0.0025, %v360_v26  ;;  %v402_v51 = vadd.f32 %v401_v45, %v1440_v14  ;;  %v377_v25 = vmul.f32 %v1437_v9, %v1415_v44 }
  0x85   :  { %v367_v31 = vmul.f32 0.0025, %v366_v28  ;;  %v400_v50 = vadd.f32 %v399_v15, %v1448_v61  ;;  %v376_v28 = vmul.f32 %v1448_v61, %v1419_v22  ;;  %v371_v15 = vadd.f32 %v370_v10, %v369_v24 }
  0x86   :  { %v1479_v33 = vadd.f32 %v355_v29, %v1412_v41  ;;  %v1485_v35 = vadd.f32 %v361_v11, %v1415_v44  ;;  %v405_v58 = vsub.f32 28.0, %v402_v51  ;;  %v409_v62 = vmul.f32 2.6666667, %v402_v51 }
  0x87   :  { %v1488_v39 = vadd.f32 %v367_v31, %v1422_v49  ;;  %v403_v56 = vsub.f32 %v400_v50, %v398_v47  ;;  %v408_v59 = vmul.f32 %v400_v50, %v398_v47  ;;  %v384_v29 = vmul.f32 %v1437_v9, %v1422_v49 }
  0x88   :  { %v462_v46 = vsub.f32 %v1479_v33, %v1473_v3  ;;  %v466_v19 = vsub.f32 %v1485_v35, %v1476_v32  ;;  %v406_v4 = vmul.f32 %v405_v58, %v398_v47  ;;  %v372_v44 = vmul.f32 2.6666667, %v1427_v23 }
  0x89   :  { %v470_v21 = vsub.f32 %v1488_v39, %v1482_v34  ;;  %v404_v5 = vmul.f32 10.0, %v403_v56  ;;  %v410_v6 = vsub.f32 %v408_v59, %v409_v62  ;;  %v386_v49 = vmul.f32 2.6666667, %v1443_v13 }
  0x8a   :  { %v463_v53 = vmul.f32 10.0, %v462_v46  ;;  %v467_v54 = vmul.f32 10.0, %v466_v19  ;;  %v407_v37 = vsub.f32 %v406_v4, %v400_v50  ;;  %v379_v46 = vmul.f32 2.6666667, %v1434_v57 }
  0x8b   :  { %v471_v55 = vmul.f32 10.0, %v470_v21  ;;  %v411_v12 = vmul.f32 0.00125, %v404_v5  ;;  %v415_v16 = vmul.f32 0.00125, %v410_v6  ;;  %v439_v11 = vmul.f32 2.0, %v404_v5 }
  0x8c   :  { %v464_v60 = vmul.f32 0.0025, %v463_v53  ;;  %v468_v0 = vmul.f32 0.0025, %v467_v54  ;;  %v413_v18 = vmul.f32 0.00125, %v407_v37  ;;  %v378_v21 = vadd.f32 %v377_v25, %v376_v28 }
  0x8d   :  { %v472_v36 = vmul.f32 0.0025, %v471_v55  ;;  %v412_v17 = vadd.f32 %v411_v12, %v1437_v9  ;;  %v416_v20 = vadd.f32 %v415_v16, %v1440_v14  ;;  %v453_v30 = vmul.f32 2.0, %v410_v6 }
  0x8e   :  { %v1502_v63 = vadd.f32 %v464_v60, %v1473_v3  ;;  %v1505_v7 = vadd.f32 %v468_v0, %v1476_v32  ;;  %v414_v26 = vadd.f32 %v413_v18, %v1448_v61  ;;  %v446_v45 = vmul.f32 2.0, %v407_v37 }
  0x8f   :  { %v1508_v8 = vadd.f32 %v472_v36, %v1482_v34  ;;  %v419_v27 = vsub.f32 28.0, %v416_v20  ;;  %v423_v42 = vmul.f32 2.6666667, %v416_v20  ;;  %v440_v50 = vadd.f32 %v439_v11, %v1465_v52 }
  0x90   :  { %v417_v31 = vsub.f32 %v414_v26, %v412_v17  ;;  %v422_v40 = vmul.f32 %v414_v26, %v412_v17  ;;  %v454_v51 = vadd.f32 %v453_v30, %v396_v43  ;;  %v385_v53 = vadd.f32 %v384_v29, %v383_v48 }
  0x91   :  { %v420_v41 = vmul.f32 %v419_v27, %v412_v17  ;;  %v373_v56 = vsub.f32 %v371_v15, %v372_v44  ;;  %v447_v59 = vadd.f32 %v446_v45, %v1468_v2  ;;  %v380_v4 = vsub.f32 %v378_v21, %v379_v46 }
  0x92   :  { %v418_v47 = vmul.f32 10.0, %v417_v31  ;;  %v424_v22 = vsub.f32 %v422_v40, %v423_v42  ;;  %v387_v18 = vsub.f32 %v385_v53, %v386_v49 }
  0x93   :  { %v421_v19 = vsub.f32 %v420_v41, %v414_v26  ;;  %v374_v17 = vmul.f32 0.0025, %v373_v56  ;;  %v381_v25 = vmul.f32 0.0025, %v380_v4 }
  0x94   :  { %v425_v38 = vmul.f32 0.0025, %v418_v47  ;;  %v429_v55 = vmul.f32 0.0025, %v424_v22  ;;  %v441_v58 = vmul.f32 2.0, %v418_v47  ;;  %v455_v62 = vmul.f32 2.0, %v424_v22 }
  0x95   :  { %v427_v54 = vmul.f32 0.0025, %v421_v19  ;;  %v448_v5 = vmul.f32 2.0, %v421_v19  ;;  %v388_v28 = vmul.f32 0.0025, %v387_v18  ;;  %v375_v29 = vadd.f32 %v374_v17, %v1427_v23 }
  0x96   :  { %v426_v60 = vadd.f32 %v425_v38, %v1437_v9  ;;  %v430_v36 = vadd.f32 %v429_v55, %v1440_v14  ;;  %v442_v6 = vadd.f32 %v441_v58, %v440_v50  ;;  %v456_v52 = vadd.f32 %v455_v62, %v454_v51 }
  0x97   :  { %v428_v0 = vadd.f32 %v427_v54, %v1448_v61  ;;  %v449_v10 = vadd.f32 %v448_v5, %v447_v59  ;;  %v382_v31 = vadd.f32 %v381_v25, %v1434_v57  ;;  %v389_v44 = vadd.f32 %v388_v28, %v1443_v13 }
  0x98   :  { %v433_v37 = vsub.f32 28.0, %v430_v36  ;;  %v437_v16 = vmul.f32 2.6666667, %v430_v36  ;;  %v495_v19 = vmul.f32 2.6666667, %v375_v29  ;;  %v1568_v25 = vmov 0.0  }
  0x99   :  { %v431_v43 = vsub.f32 %v428_v0, %v426_v60  ;;  %v436_v12 = vmul.f32 %v428_v0, %v426_v60  ;;  %v502_v21 = vmul.f32 2.6666667, %v382_v31  ;;  %v509_v56 = vmul.f32 2.6666667, %v389_v44 }
  0x9a   :  { %v434_v24 = vmul.f32 %v433_v37, %v426_v60  ;;  %v1582_v28 = vmov 0.0  }
  0x9b   :  { %v432_v20 = vmul.f32 10.0, %v431_v43  ;;  %v438_v2 = vsub.f32 %v436_v12, %v437_v16 }
  0x9c   :  { %v435_v26 = vsub.f32 %v434_v24, %v428_v0 }
  0x9d   :  { %v443_v27 = vadd.f32 %v442_v6, %v432_v20  ;;  %v457_v42 = vadd.f32 %v456_v52, %v438_v2 }
  0x9e   :  { %v450_v30 = vadd.f32 %v449_v10, %v435_v26  ;;  %v1566_v10 = vmov 0.0   ;;  %v1570_v26 = vmov 0.0  }
  0x9f   :  { %v444_v11 = vmul.f32 0.00041666668, %v443_v27  ;;  %v458_v48 = vmul.f32 0.00041666668, %v457_v42  ;;  %v1576_v27 = vmov 0.0   ;;  %v1580_v42 = vmov 0.0  }
  0xa0   :  { %v451_v40 = vmul.f32 0.00041666668, %v450_v30  ;;  %v1588_v30 = vmov 0.0  }
  0xa1   :  { %v445_v41 = vadd.f32 %v444_v11, %v1437_v9  ;;  %v459_v15 = vadd.f32 %v458_v48, %v1440_v14  ;;  %v1586_v11 = vmov 1.0   ;;  %v1590_v48 = vmov 0.0  }
  0xa2   :  { %v452_v45 = vadd.f32 %v451_v40, %v1448_v61 }
  0xa3   :  { %v460_v46 = vsub.f32 28.0, %v459_v15  ;;  %v461_v47 = vsub.f32 0.0, %v445_v41  ;;  %v493_v22 = vmul.f32 %v445_v41, %v1479_v33  ;;  %v500_v23 = vmul.f32 %v445_v41, %v1485_v35 }
  0xa4   :  { %v507_v49 = vmul.f32 %v445_v41, %v1488_v39  ;;  %v492_v61 = vmul.f32 %v452_v45, %v1473_v3  ;;  %v499_v53 = vmul.f32 %v452_v45, %v1476_v32  ;;  %v506_v55 = vmul.f32 %v452_v45, %v1482_v34 }
  0xa5   :  { %v474_v57 = vmul.f32 %v460_v46, %v1473_v3  ;;  %v476_v9 = vmul.f32 %v461_v47, %v375_v29  ;;  %v480_v50 = vmul.f32 %v460_v46, %v1476_v32  ;;  %v482_v14 = vmul.f32 %v461_v47, %v382_v31 }
  0xa6   :  { %v486_v13 = vmul.f32 %v460_v46, %v1482_v34  ;;  %v488_v51 = vmul.f32 %v461_v47, %v389_v44  ;;  %v494_v59 = vadd.f32 %v493_v22, %v492_v61  ;;  %v501_v62 = vadd.f32 %v500_v23, %v499_v53 }
  0xa7   :  { %v475_v38 = vsub.f32 %v474_v57, %v1479_v33  ;;  %v481_v54 = vsub.f32 %v480_v50, %v1485_v35  ;;  %v508_v36 = vadd.f32 %v507_v49, %v506_v55  ;;  %v1594_v41 = vmov 1.0  }
  0xa8   :  { %v487_v58 = vsub.f32 %v486_v13, %v1488_v39  ;;  %v496_v4 = vsub.f32 %v494_v59, %v495_v19  ;;  %v503_v6 = vsub.f32 %v501_v62, %v502_v21 }
  0xa9   :  { %v477_v60 = vadd.f32 %v476_v9, %v475_v38  ;;  %v483_v0 = vadd.f32 %v482_v14, %v481_v54  ;;  %v510_v32 = vsub.f32 %v508_v36, %v509_v56 }
  0xaa   :  { %v489_v5 = vadd.f32 %v488_v51, %v487_v58  ;;  %v497_v37 = vmul.f32 0.0025, %v496_v4  ;;  %v504_v12 = vmul.f32 0.0025, %v503_v6 }
  0xab   :  { %v478_v3 = vmul.f32 0.0025, %v477_v60  ;;  %v484_v52 = vmul.f32 0.0025, %v483_v0  ;;  %v511_v17 = vmul.f32 0.0025, %v510_v32 }
  0xac   :  { %v490_v43 = vmul.f32 0.0025, %v489_v5  ;;  %v1560_v20 = vadd.f32 %v497_v37, %v375_v29  ;;  %v1562_v24 = vadd.f32 %v504_v12, %v382_v31  ;;  %v1584_v29 = vmov 0.0  }
  0xad   :  { %v1552_v16 = vadd.f32 %v478_v3, %v1479_v33  ;;  %v1555_v34 = vadd.f32 %v484_v52, %v1485_v35  ;;  %v1564_v2 = vadd.f32 %v511_v17, %v389_v44  ;;  %v1572_v33 = vmov 0.0  }
  0xae   :  { %v1558_v18 = vadd.f32 %v490_v43, %v1488_v39  ;;  %v1574_v35 = vmov 0.0   ;;  %v1578_v39 = vmov 1.0   ;;  %v1592_v31 = vmov 0.0  }
  0xaf LB: > { %v534_v40 = vstv %s1207_s13  ;;  %s1701_s13 = sadd.s32 1, %s1207_s13   ;;  %s1207_s13 = sphi %s1596_s13, %s1701_s13   ;;  %v1203_v41 = vphi %v1594_v41, %v1722_v41   ;;  %v1199_v31 = vphi %v1592_v31, %v650_v31   ;;  %v1195_v48 = vphi %v1590_v48, %v1834_v48   ;;  %v1191_v30 = vphi %v1588_v30, %v1724_v30   ;;  %v1187_v11 = vphi %v1586_v11, %v651_v11   ;;  %v1183_v29 = vphi %v1584_v29, %v690_v29   ;;  %v1179_v28 = vphi %v1582_v28, %v1726_v28   ;;  %v1175_v42 = vphi %v1580_v42, %v652_v42   ;;  %v1171_v39 = vphi %v1578_v39, %v691_v39   ;;  %v1167_v27 = vphi %v1576_v27, %v1757_v27   ;;  %v1163_v35 = vphi %v1574_v35, %v699_v35   ;;  %v1159_v33 = vphi %v1572_v33, %v703_v33   ;;  %v1155_v26 = vphi %v1570_v26, %v1833_v26   ;;  %v1151_v25 = vphi %v1568_v25, %v1832_v25   ;;  %v1147_v10 = vphi %v1566_v10, %v1830_v10  }
  0xb0   : > { %vm1642_vm1 = vcmp.eq.s32.totalorder %v1223_v1, %v534_v40  ;;  %p515_p1 = scmp.ge.s32.totalorder %s1701_s13, 128  }
  0xb1   : > { %v545_v44 = vsel %vm1642_vm1, %v1552_v16, 0.0  ;;  %v536_v45 = vsel %vm1642_vm1, %v1502_v63, 0.0  ;;  %v548_v46 = vsel %vm1642_vm1, %v1555_v34, 0.0  ;;  %v539_v47 = vsel %vm1642_vm1, %v1505_v7, 0.0 }
  0xb2   : > { %546 = vadd.xlane.f32.xlu1 %v545_v44  ;;  %537 = vadd.xlane.f32.xlu0 %v536_v45  ;;  %v551_v19 = vsel %vm1642_vm1, %v1558_v18, 0.0  ;;  %v542_v22 = vsel %vm1642_vm1, %v1508_v8, 0.0  ;;  %v557_v23 = vsel %vm1642_vm1, %v1562_v24, 0.0  ;;  %v554_v21 = vsel %vm1642_vm1, %v1560_v20, 0.0 }
  0xb3   : > { %v560_v49 = vsel %vm1642_vm1, %v1564_v2, 0.0  ;;  %v705_v44 = vstv %s1701_s13  ;;  %vm719_vm8 = vcmask (%p515_p1), 1040384   ;;  %vm721_vm9 = vcmask (%p515_p1), 1041408  }
  0xb4   :  { %vm723_vm10 = vcmask (%p515_p1), 2048  }
  0xb6   : > { %549 = vadd.xlane.f32.xlu1 %v548_v46  ;;  %540 = vadd.xlane.f32.xlu0 %v539_v47 }
  0xba   : > { %552 = vadd.xlane.f32.xlu1 %v551_v19  ;;  %543 = vadd.xlane.f32.xlu0 %v542_v22 }
  0xbe   : > { %558 = vadd.xlane.f32.xlu1 %v557_v23  ;;  %555 = vadd.xlane.f32.xlu0 %v554_v21 }
  0xc2   : > { %561 = vadd.xlane.f32.xlu0 %v560_v49  ;;  %v706_v49 = vcvt.s32.f32 %v705_v44 }
 0x13b   : > { %v1673_v57 = vpop.xlane.xlu1 %546  ;;  %v1675_v9 = vpop.xlane.xlu0 %537 }
 0x13c   : > { %v578_v38 = vmul.f32 %v1203_v41, %v1673_v57  ;;  %v563_v54 = vmul.f32 %v1203_v41, %v1675_v9  ;;  %v568_v46 = vmul.f32 %v1199_v31, %v1675_v9 }
 0x13f   : > { %v1677_v50 = vpop.xlane.xlu1 %549  ;;  %v1679_v14 = vpop.xlane.xlu0 %540 }
 0x140   : > { %v579_v13 = vmul.f32 %v1191_v30, %v1677_v50  ;;  %v564_v51 = vmul.f32 %v1191_v30, %v1679_v14 }
 0x142   : > { %v580_v58 = vadd.f32 %v579_v13, %v578_v38  ;;  %v565_v59 = vadd.f32 %v564_v51, %v563_v54 }
 0x143   : > { %v1683_v61 = vpop.xlane.xlu1 %552  ;;  %v1685_v53 = vpop.xlane.xlu0 %543 }
 0x144   : > { %v581_v55 = vmul.f32 %v1179_v28, %v1683_v61  ;;  %v566_v56 = vmul.f32 %v1179_v28, %v1685_v53  ;;  %v586_v45 = vmul.f32 %v1175_v42, %v1683_v61  ;;  %v571_v47 = vmul.f32 %v1175_v42, %v1685_v53 }
 0x146   : > { %v582_v0 = vadd.f32 %v581_v55, %v580_v58  ;;  %v567_v36 = vadd.f32 %v566_v56, %v565_v59 }
 0x147   : > { %v1691_v62 = vpop.xlane.xlu1 %558  ;;  %v1693_v60 = vpop.xlane.xlu0 %555 }
 0x148   : > { %v594_v5 = vmul.f32 %v1191_v30, %v1691_v62  ;;  %v593_v4 = vmul.f32 %v1203_v41, %v1693_v60  ;;  %v609_v3 = vmul.f32 %v582_v0, %v582_v0  ;;  %v608_v52 = vmul.f32 %v567_v36, %v567_v36 }
 0x149   : > { %v584_v30 = vmul.f32 %v1187_v11, %v1677_v50  ;;  %v569_v41 = vmul.f32 %v1187_v11, %v1679_v14  ;;  %v599_v19 = vmul.f32 %v1187_v11, %v1691_v62  ;;  %v598_v22 = vmul.f32 %v1199_v31, %v1693_v60 }
 0x14a   : > { %v595_v32 = vadd.f32 %v594_v5, %v593_v4  ;;  %v610_v12 = vadd.f32 %v609_v3, %v608_v52 }
 0x14b   : > { %v1697_v6 = vpop.xlane.xlu0 %561  ;;  %v570_v13 = vadd.f32 %v569_v41, %v568_v46  ;;  %v600_v59 = vadd.f32 %v599_v19, %v598_v22  ;;  %v588_v46 = vmul.f32 %v1195_v48, %v1673_v57  ;;  %v573_v19 = vmul.f32 %v1195_v48, %v1675_v9 }
 0x14c   : > { %v596_v43 = vmul.f32 %v1179_v28, %v1697_v6  ;;  %v583_v28 = vmul.f32 %v1199_v31, %v1673_v57  ;;  %v601_v54 = vmul.f32 %v1175_v42, %v1697_v6  ;;  %v707_v31 = vmul.f32 0.01, %v706_v49 }
 0x14d   : > { %v572_v58 = vadd.f32 %v571_v47, %v570_v13  ;;  %v591_v47 = vmul.f32 %v1171_v39, %v1683_v61  ;;  %v576_v22 = vmul.f32 %v1171_v39, %v1685_v53  ;;  %v604_v57 = vmul.f32 %v1183_v29, %v1691_v62 }
 0x14e   : > { %v597_v37 = vadd.f32 %v596_v43, %v595_v32  ;;  %v585_v21 = vadd.f32 %v584_v30, %v583_v28  ;;  %v602_v3 = vadd.f32 %v601_v54, %v600_v59  ;;  %v603_v61 = vmul.f32 %v1195_v48, %v1693_v60 }
 0x14f   : > { %v606_v53 = vmul.f32 %v1171_v39, %v1697_v6 }
 0x150   : > { %v611_v17 = vmul.f32 %v597_v37, %v597_v37  ;;  %v587_v38 = vadd.f32 %v586_v45, %v585_v21 }
 0x152   : > { %v612_v40 = vadd.f32 %v611_v17, %v610_v12  ;;  %v589_v17 = vmul.f32 %v1183_v29, %v1677_v50 }
 0x154   : > { %995 = vrsqrt.f32 %v612_v40  ;;  %v620_v15 = vadd.f32 1e-30, %v612_v40  ;;  %vm615_vm2 = vcmp.eq.f32.partialorder %v612_v40, inf  ;;  %v618_v55 = vand.u32 2147483648, %v612_v40 }
 0x155   : > { %vm617_vm3 = vcmp.eq.f32.partialorder %v612_v40, 0.0  ;;  %v590_v21 = vadd.f32 %v589_v17, %v588_v46 }
 0x156   : > { %997 = vrsqrt.f32 %v620_v15 }
 0x161   : > { %v996_v23 = vpop.eup %995 }
 0x162   : > { %v614_v51 = vmul.f32 %v996_v23, %v612_v40 }
 0x163   : > { %v998_v56 = vpop.eup %997 }
 0x164   : > { %v616_v5 = vsel %vm615_vm2, %v612_v40, %v614_v51  ;;  %v1722_v41 = vmul.f32 %v998_v56, %v567_v36   ;;  %v1724_v30 = vmul.f32 %v998_v56, %v582_v0   ;;  %v1726_v28 = vmul.f32 %v998_v56, %v597_v37  }
 0x165   : > { %v619_v11 = vsel %vm617_vm3, %v618_v55, %v616_v5  ;;  %v574_v40 = vmul.f32 %v1183_v29, %v1679_v14  ;;  %v592_v51 = vadd.f32 %v591_v47, %v590_v21  ;;  %v605_v29 = vadd.f32 %v604_v57, %v603_v61 }
 0x166   : > { %v692_v4 = vadd.f32 1e-30, %v619_v11  ;;  %v625_v52 = vmul.f32 %v1722_v41, %v572_v58  ;;  %v626_v42 = vmul.f32 %v1724_v30, %v587_v38  ;;  %v628_v43 = vmul.f32 %v1726_v28, %v602_v3 }
 0x167   : > { %v575_v49 = vadd.f32 %v574_v40, %v573_v19  ;;  %v654_v59 = vmul.f32 %v1724_v30, %v592_v51  ;;  %v607_v62 = vadd.f32 %v606_v53, %v605_v29 }
 0x168   : > { %999 = vlog2.f32 %v692_v4  ;;  %v627_v32 = vadd.f32 %v626_v42, %v625_v52 }
 0x169   : > { %1001 = vrcp.f32 %v707_v31  ;;  %v577_v54 = vadd.f32 %v576_v22, %v575_v49  ;;  %v656_v39 = vmul.f32 %v1726_v28, %v607_v62 }
 0x16a   : > { %v629_v12 = vadd.f32 %v628_v43, %v627_v32 }
 0x16c   : > { %v630_v36 = vmul.f32 %v629_v12, %v1722_v41  ;;  %v632_v0 = vmul.f32 %v629_v12, %v1724_v30  ;;  %v634_v37 = vmul.f32 %v629_v12, %v1726_v28 }
 0x16e   : > { %v631_v15 = vsub.f32 %v572_v58, %v630_v36  ;;  %v633_v44 = vsub.f32 %v587_v38, %v632_v0  ;;  %v635_v45 = vsub.f32 %v602_v3, %v634_v37  ;;  %v653_v58 = vmul.f32 %v1722_v41, %v577_v54 }
 0x170   : > { %v636_v23 = vmul.f32 %v631_v15, %v631_v15  ;;  %v637_v50 = vmul.f32 %v633_v44, %v633_v44  ;;  %v639_v13 = vmul.f32 %v635_v45, %v635_v45  ;;  %v655_v60 = vadd.f32 %v654_v59, %v653_v58 }
 0x172   : > { %v638_v14 = vadd.f32 %v637_v50, %v636_v23  ;;  %v657_v6 = vadd.f32 %v656_v39, %v655_v60 }
 0x174   : > { %v640_v55 = vadd.f32 %v639_v13, %v638_v14  ;;  %v658_v11 = vmul.f32 %v657_v6, %v1722_v41  ;;  %v660_v31 = vmul.f32 %v657_v6, %v1724_v30  ;;  %v662_v32 = vmul.f32 %v657_v6, %v1726_v28 }
 0x175   : > { %v1000_v38 = vpop.eup %999 }
 0x176   : > { %v694_v9 = vmul.f32 0.6931472, %v1000_v38  ;;  %v1750_v56 = vpop.eup %1001  ;;  %1003 = vrsqrt.f32 %v640_v55  ;;  %v648_v5 = vadd.f32 1e-30, %v640_v55  ;;  %vm643_vm4 = vcmp.eq.f32.partialorder %v640_v55, inf }
 0x177   : > { %v646_v42 = vand.u32 2147483648, %v640_v55  ;;  %vm645_vm5 = vcmp.eq.f32.partialorder %v640_v55, 0.0  ;;  %v659_v36 = vsub.f32 %v577_v54, %v658_v11  ;;  %v661_v0 = vsub.f32 %v592_v51, %v660_v31 }
 0x178   : > { %v1757_v27 = vadd.f32 %v1167_v27, %v694_v9   ;;  %1005 = vrsqrt.f32 %v648_v5  ;;  %v663_v17 = vsub.f32 %v607_v62, %v662_v32 }
 0x17a   : > { %v710_v48 = vmul.f32 %v1750_v56, %v1757_v27 }
 0x17c   : > { %v1762_v26 = vadd.f32 %v1155_v26, %v710_v48  }
 0x17e   : > { %v1829_v4 = vmov %v1762_v26 }
 0x183   : > { %v1004_v3 = vpop.eup %1003 }
 0x184   : > { %v642_v52 = vmul.f32 %v1004_v3, %v640_v55 }
 0x185   : > { %v1006_v43 = vpop.eup %1005 }
 0x186   : > { %v644_v12 = vsel %vm643_vm4, %v640_v55, %v642_v52  ;;  %v650_v31 = vmul.f32 %v1006_v43, %v631_v15   ;;  %v651_v11 = vmul.f32 %v1006_v43, %v633_v44  }
 0x187   : > { %v647_v37 = vsel %vm645_vm5, %v646_v42, %v644_v12  ;;  %v652_v42 = vmul.f32 %v1006_v43, %v635_v45  }
 0x188   : > { %v696_v26 = vadd.f32 1e-30, %v647_v37  ;;  %v664_v40 = vmul.f32 %v659_v36, %v650_v31  ;;  %v665_v46 = vmul.f32 %v661_v0, %v651_v11 }
 0x189   : > { %v667_v19 = vmul.f32 %v663_v17, %v652_v42 }
 0x18a   : > { %1007 = vlog2.f32 %v696_v26  ;;  %v666_v47 = vadd.f32 %v665_v46, %v664_v40  ;;  %v1833_v26 = vmov %v1829_v4 }
 0x18c   : > { %v668_v22 = vadd.f32 %v667_v19, %v666_v47 }
 0x18e   : > { %v669_v23 = vmul.f32 %v668_v22, %v650_v31  ;;  %v671_v50 = vmul.f32 %v668_v22, %v651_v11  ;;  %v673_v21 = vmul.f32 %v668_v22, %v652_v42 }
 0x190   : > { %v670_v49 = vsub.f32 %v659_v36, %v669_v23  ;;  %v672_v14 = vsub.f32 %v661_v0, %v671_v50  ;;  %v674_v13 = vsub.f32 %v663_v17, %v673_v21 }
 0x192   : > { %v675_v38 = vmul.f32 %v670_v49, %v670_v49  ;;  %v676_v51 = vmul.f32 %v672_v14, %v672_v14  ;;  %v678_v15 = vmul.f32 %v674_v13, %v674_v13 }
 0x194   : > { %v677_v54 = vadd.f32 %v676_v51, %v675_v38 }
 0x196   : > { %v679_v45 = vadd.f32 %v678_v15, %v677_v54 }
 0x197   : > { %v1008_v44 = vpop.eup %1007 }
 0x198   : > { %v698_v57 = vmul.f32 0.6931472, %v1008_v44  ;;  %1009 = vrsqrt.f32 %v679_v45  ;;  %v687_v61 = vadd.f32 1e-30, %v679_v45  ;;  %vm682_vm6 = vcmp.eq.f32.partialorder %v679_v45, inf }
 0x199   : > { %v685_v59 = vand.u32 2147483648, %v679_v45  ;;  %vm684_vm7 = vcmp.eq.f32.partialorder %v679_v45, 0.0 }
 0x19a   : > { %v699_v35 = vadd.f32 %v1163_v35, %v698_v57   ;;  %1011 = vrsqrt.f32 %v687_v61 }
 0x19c   : > { %v712_v55 = vmul.f32 %v1750_v56, %v699_v35 }
 0x19e   : > { %v713_v9 = vadd.f32 %v1151_v25, %v712_v55  }
 0x1a0   : > { %v1832_v25 = vmov %v713_v9  ;;  %v717_v43 = vmul.f32 (%p515_p1), 0.0078125, %v713_v9 }
 0x1a5   : > { %v1010_v53 = vpop.eup %1009 }
 0x1a6   : > { %v681_v58 = vmul.f32 %v1010_v53, %v679_v45 }
 0x1a7   : > { %v1012_v5 = vpop.eup %1011 }
 0x1a8   : > { %v683_v29 = vsel %vm682_vm6, %v679_v45, %v681_v58  ;;  %v689_v62 = vmul.f32 %v1012_v5, %v670_v49   ;;  %v691_v39 = vmul.f32 %v1012_v5, %v674_v13  }
 0x1a9   : > { %v686_v48 = vsel %vm684_vm7, %v685_v59, %v683_v29  ;;  %v690_v29 = vmul.f32 %v1012_v5, %v672_v14  }
 0x1aa   : > { %v700_v60 = vadd.f32 1e-30, %v686_v48  ;;  %v1834_v48 = vmov %v689_v62 }
 0x1ac   : > { %1013 = vlog2.f32 %v700_v60 }
 0x1b9   : > { %v1014_v6 = vpop.eup %1013 }
 0x1ba   : > { %v702_v3 = vmul.f32 0.6931472, %v1014_v6 }
 0x1bc   : > { %v703_v33 = vadd.f32 %v1159_v33, %v702_v3  }
 0x1be   : > { %v714_v52 = vmul.f32 %v1750_v56, %v703_v33  ;;  %517 = sbr.rel (!%p515_p1) target bundleno = 175 (0xaf), region = 53  ;;  %v716_v56 = vmul.f32 (%p515_p1), 0.0078125, %v1829_v4 }
 0x1c0   : > { %v715_v32 = vadd.f32 %v1147_v10, %v714_v52   ;;  %v720_v36 = vsel (%p515_p1), %vm719_vm8, %v716_v56, %v717_v43 }
 0x1c2   : > { %v1830_v10 = vmov %v715_v32  ;;  %v718_v12 = vmul.f32 (%p515_p1), 0.0078125, %v715_v32 }
 0x1c4   :  { %v722_v0 = vsel %vm721_vm9, %v720_v36, %v718_v12 }
 0x1c5   :  { %724 = vst.msk [vmem:[%s1820_s1] sm:$0x7] %vm723_vm10, %v722_v0 }
 0x1c6   :  { %729 = vsyncpa [#allocation3], 1 }

</bundles_post_ra>
